<compile_context>
chip_gen: v7x
topology: tpu7x:2x2x1
jax: 0.10.0
libtpu: 0.0.40
codegen_flags: <defaults>
</compile_context>

<pallas_src>
import functools

import jax
import jax.numpy as jnp
from jax.experimental import pallas as pl
from jax.experimental.pallas import tpu as pltpu

P = 128          # padded feature width (TPU lane width)
BN_EPS = 1e-5    # PyTorch BatchNorm1d default


# ----------------------------------------------------------------------------
# Pallas kernel: fused (Linear -> BatchNorm1d(train) -> ReLU) x n_layers
# ----------------------------------------------------------------------------
def _make_deepsurv_kernel(n_layers, eps=BN_EPS):
    def kernel(x_ref, w_ref, gb_ref, out_ref):
        h = x_ref[...]                                            # (B, P) f32
        for i in range(n_layers):
            w = w_ref[i]                                          # (P, P) bf16, static slice

            # Linear.  Bias dropped: exactly cancelled by train-mode BN mean
            # subtraction.  bf16 MXU inputs, f32 accumulation.
            h = jnp.dot(h.astype(jnp.bfloat16), w,
                        preferred_element_type=jnp.float32)        # (B, P) f32

            # BatchNorm1d (train mode): single reduction pass, f32 stats.
            m = jnp.mean(h, axis=0, keepdims=True)                 # (1, P)
            m2 = jnp.mean(h * h, axis=0, keepdims=True)            # (1, P)
            var = jnp.maximum(m2 - m * m, 0.0)                     # guard f32 cancellation

            gamma = gb_ref[2 * i : 2 * i + 1, :]                   # (1, P)
            beta = gb_ref[2 * i + 1 : 2 * i + 2, :]                # (1, P)
            scale = gamma * jax.lax.rsqrt(var + eps)               # (1, P)
            offset = beta - m * scale                              # (1, P)

            # Fused BN-apply + ReLU on the (B, P) tensor: mul, add, max.
            h = jnp.maximum(h * scale + offset, 0.0)

        out_ref[...] = h.astype(out_ref.dtype)                     # lane-dense (B, P)

    return kernel


# ----------------------------------------------------------------------------
# Wrapper
# ----------------------------------------------------------------------------
@functools.partial(jax.jit, static_argnames=("out_dim",))
def deepsurv_forward(x_pad, w_slab, gb_slab, out_dim):
    """x_pad: (B, P) f32. w_slab: (L, P, P) bf16. gb_slab: (2L, P) f32.

    Returns (B, out_dim) f32.
    """
    B, p = x_pad.shape
    n_layers = w_slab.shape[0]
    vmem = pl.BlockSpec(memory_space=pltpu.MemorySpace.VMEM)

    out = pl.pallas_call(
        _make_deepsurv_kernel(n_layers),
        out_shape=jax.ShapeDtypeStruct((B, p), jnp.float32),
        in_specs=[vmem, vmem, vmem],
        out_specs=vmem,
    )(x_pad, w_slab, gb_slab)
    return out[:, :out_dim]


# ----------------------------------------------------------------------------
# Deterministic parameter init (mirrors PyTorch defaults) + packing
# ----------------------------------------------------------------------------
def init_params(key, dims):
    """Linear: U(-1/sqrt(fan_in), 1/sqrt(fan_in)); BatchNorm: gamma=1, beta=0."""
    flat = []
    for i in range(len(dims) - 1):
        d_in, d_out = dims[i], dims[i + 1]
        key, kw, kb = jax.random.split(key, 3)
        bound = 1.0 / jnp.sqrt(d_in)
        # stored as (d_in, d_out) == PyTorch weight.T
        w = jax.random.uniform(kw, (d_in, d_out), jnp.float32, -bound, bound)
        b = jax.random.uniform(kb, (1, d_out), jnp.float32, -bound, bound)
        gamma = jnp.ones((1, d_out), jnp.float32)
        beta = jnp.zeros((1, d_out), jnp.float32)
        flat += [w, b, gamma, beta]
    return flat


def pack_params(flat_params, dims, p=P):
    """Pack per-layer params into two zero-padded, lane-dense slabs.

    w_slab is stored in bf16 (MXU-native on v6e/v7x, halves the weight DMA).
    The Linear bias is intentionally NOT packed: followed by train-mode
    BatchNorm it is mathematically a no-op.  Padded gamma/beta rows stay 0 so
    the padded feature columns remain exactly 0 through BN + ReLU.
    """
    n_layers = len(dims) - 1
    w_slab = jnp.zeros((n_layers, p, p), jnp.float32)
    gb_slab = jnp.zeros((2 * n_layers, p), jnp.float32)
    for i in range(n_layers):
        w, _b, gamma, beta = flat_params[4 * i : 4 * i + 4]
        d_in, d_out = dims[i], dims[i + 1]
        w_slab = w_slab.at[i, :d_in, :d_out].set(w)
        gb_slab = gb_slab.at[2 * i, :d_out].set(gamma[0])
        gb_slab = gb_slab.at[2 * i + 1, :d_out].set(beta[0])
    return w_slab.astype(jnp.bfloat16), gb_slab


def pad_input(x, p=P):
    B, d = x.shape
    return jnp.zeros((B, p), x.dtype).at[:, :d].set(x)


# ----------------------------------------------------------------------------
# Pure-JAX references.
#  * reference_forward_bf16: identical math model to the kernel's numerics
#    (bf16 matmul inputs, f32 accumulation, full PyTorch BN with bias and
#    two-pass variance) -> tight tolerance check of the fused kernel.
#  * reference_forward_f32: exact f32 PyTorch semantics -> loose sanity check
#    that the bf16 MXU path stays close to the original module.
# ----------------------------------------------------------------------------
def reference_forward_bf16(x, flat_params, n_layers, eps=BN_EPS):
    h = x.astype(jnp.float32)
    for i in range(n_layers):
        w, b, gamma, beta = flat_params[4 * i : 4 * i + 4]
        h = jnp.dot(h.astype(jnp.bfloat16), w.astype(jnp.bfloat16),
                    preferred_element_type=jnp.float32) + b
        mean = jnp.mean(h, axis=0, keepdims=True)
        var = jnp.mean((h - mean) ** 2, axis=0, keepdims=True)
        h = gamma * (h - mean) * jax.lax.rsqrt(var + eps) + beta
        h = jnp.maximum(h, 0.0)
    return h


def reference_forward_f32(x, flat_params, n_layers, eps=BN_EPS):
    h = x.astype(jnp.float32)
    for i in range(n_layers):
        w, b, gamma, beta = flat_params[4 * i : 4 * i + 4]
        h = h @ w + b
        mean = jnp.mean(h, axis=0, keepdims=True)
        var = jnp.mean((h - mean) ** 2, axis=0, keepdims=True)
        h = gamma * (h - mean) * jax.lax.rsqrt(var + eps) + beta
        h = jnp.maximum(h, 0.0)
    return h


if __name__ == "__main__":
    config = {
        "drop": None,          # no Dropout layers are built when drop is None
        "norm": True,
        "dims": [16, 32, 32, 1],
        "activation": "ReLU",
    }
    # TODO(synk): if config['drop'] were not None, train-mode dropout between
    # layers would need pltpu.prng_random_bits masking; omitted since drop=None.

    dims = config["dims"]
    n_layers = len(dims) - 1
    batch = 256  # fills the MXU M dimension (>=128 v5e / >=256 v6e-v7x)

    key = jax.random.PRNGKey(0)
    key, kx = jax.random.split(key)
    x = jax.random.normal(kx, (batch, dims[0]), jnp.float32)
    flat_params = init_params(key, dims)

    w_slab, gb_slab = pack_params(flat_params, dims)
    x_pad = pad_input(x)

    out = deepsurv_forward(x_pad, w_slab, gb_slab, dims[-1])
    out = jax.block_until_ready(out)
    assert out.shape == (batch, dims[-1]), out.shape

    # Tight check: kernel vs. a reference with identical bf16-matmul numerics
    # (proves the fused BN/ReLU, bias-cancellation and 128-padding are exact).
    ref_bf16 = reference_forward_bf16(x, flat_params, n_layers)
    assert jnp.allclose(out, ref_bf16, atol=2e-3, rtol=2e-3)

    # Loose check: kernel vs. exact f32 PyTorch semantics (bf16 MXU inputs
    # only perturb the normalized activations at the ~1e-2 level).
    ref_f32 = reference_forward_f32(x, flat_params, n_layers)
    assert jnp.allclose(out, ref_f32, atol=1e-1, rtol=1e-1)

    print("KERNEL_OK")
</pallas_src>

<mosaic_0001>
module attributes {stable_mosaic.version = 11 : i64} {
  func.func @kernel(%arg0: memref<256x128xf32, #tpu.memory_space<vmem>>, %arg1: memref<3x128x128xbf16, #tpu.memory_space<vmem>>, %arg2: memref<6x128xf32, #tpu.memory_space<vmem>>, %arg3: memref<256x128xf32, #tpu.memory_space<vmem>>) attributes {dimension_semantics = [], scalar_prefetch = 0 : i64, scratch_operands = 0 : i64, tpu.core_type = #tpu.core_type<tc>} {
    %c0 = arith.constant 0 : index
    %c0_0 = arith.constant 0 : index
    %0 = vector.load %arg0[%c0, %c0_0] : memref<256x128xf32, #tpu.memory_space<vmem>>, vector<256x128xf32>
    %c0_1 = arith.constant 0 : index
    %c0_2 = arith.constant 0 : index
    %c0_3 = arith.constant 0 : index
    %1 = vector.load %arg1[%c0_1, %c0_2, %c0_3] : memref<3x128x128xbf16, #tpu.memory_space<vmem>>, vector<1x128x128xbf16>
    %2 = vector.shape_cast %1 : vector<1x128x128xbf16> to vector<128x128xbf16>
    %3 = arith.truncf %0 : vector<256x128xf32> to vector<256x128xbf16>
    %cst = arith.constant dense<0.000000e+00> : vector<256x128xf32>
    %4 = tpu.matmul %3, %2, %cst {dimension_numbers = #tpu.dot_dimension_numbers<[1], [0], [0], [1], [0, 0, 1, 1], [], []>} : vector<256x128xbf16>, vector<128x128xbf16>, vector<256x128xf32> -> vector<256x128xf32>
    %cst_4 = arith.constant dense<0.000000e+00> : vector<128xf32>
    %5 = vector.multi_reduction <add>, %4, %cst_4 [0] : vector<256x128xf32> to vector<128xf32>
    %6 = vector.shape_cast %5 : vector<128xf32> to vector<1x128xf32>
    %cst_5 = arith.constant 2.560000e+02 : f32
    %7 = vector.broadcast %cst_5 : f32 to vector<1x128xf32>
    %8 = arith.divf %6, %7 : vector<1x128xf32>
    %9 = arith.mulf %4, %4 : vector<256x128xf32>
    %cst_6 = arith.constant dense<0.000000e+00> : vector<128xf32>
    %10 = vector.multi_reduction <add>, %9, %cst_6 [0] : vector<256x128xf32> to vector<128xf32>
    %11 = vector.shape_cast %10 : vector<128xf32> to vector<1x128xf32>
    %cst_7 = arith.constant 2.560000e+02 : f32
    %12 = vector.broadcast %cst_7 : f32 to vector<1x128xf32>
    %13 = arith.divf %11, %12 : vector<1x128xf32>
    %14 = arith.mulf %8, %8 : vector<1x128xf32>
    %15 = arith.subf %13, %14 : vector<1x128xf32>
    %cst_8 = arith.constant 0.000000e+00 : f32
    %16 = vector.broadcast %cst_8 : f32 to vector<1x128xf32>
    %17 = arith.maximumf %15, %16 : vector<1x128xf32>
    %c0_9 = arith.constant 0 : index
    %c0_10 = arith.constant 0 : index
    %18 = vector.load %arg2[%c0_9, %c0_10] : memref<6x128xf32, #tpu.memory_space<vmem>>, vector<1x128xf32>
    %c1 = arith.constant 1 : index
    %c0_11 = arith.constant 0 : index
    %19 = vector.load %arg2[%c1, %c0_11] : memref<6x128xf32, #tpu.memory_space<vmem>>, vector<1x128xf32>
    %cst_12 = arith.constant 9.99999974E-6 : f32
    %20 = vector.broadcast %cst_12 : f32 to vector<1x128xf32>
    %21 = arith.addf %17, %20 : vector<1x128xf32>
    %22 = math.rsqrt %21 : vector<1x128xf32>
    %23 = arith.mulf %18, %22 : vector<1x128xf32>
    %24 = arith.mulf %8, %23 : vector<1x128xf32>
    %25 = arith.subf %19, %24 : vector<1x128xf32>
    %26 = vector.broadcast %23 : vector<1x128xf32> to vector<256x128xf32>
    %27 = arith.mulf %4, %26 : vector<256x128xf32>
    %28 = vector.broadcast %25 : vector<1x128xf32> to vector<256x128xf32>
    %29 = arith.addf %27, %28 : vector<256x128xf32>
    %cst_13 = arith.constant 0.000000e+00 : f32
    %30 = vector.broadcast %cst_13 : f32 to vector<256x128xf32>
    %31 = arith.maximumf %29, %30 : vector<256x128xf32>
    %c1_14 = arith.constant 1 : index
    %c0_15 = arith.constant 0 : index
    %c0_16 = arith.constant 0 : index
    %32 = vector.load %arg1[%c1_14, %c0_15, %c0_16] : memref<3x128x128xbf16, #tpu.memory_space<vmem>>, vector<1x128x128xbf16>
    %33 = vector.shape_cast %32 : vector<1x128x128xbf16> to vector<128x128xbf16>
    %34 = arith.truncf %31 : vector<256x128xf32> to vector<256x128xbf16>
    %cst_17 = arith.constant dense<0.000000e+00> : vector<256x128xf32>
    %35 = tpu.matmul %34, %33, %cst_17 {dimension_numbers = #tpu.dot_dimension_numbers<[1], [0], [0], [1], [0, 0, 1, 1], [], []>} : vector<256x128xbf16>, vector<128x128xbf16>, vector<256x128xf32> -> vector<256x128xf32>
    %cst_18 = arith.constant dense<0.000000e+00> : vector<128xf32>
    %36 = vector.multi_reduction <add>, %35, %cst_18 [0] : vector<256x128xf32> to vector<128xf32>
    %37 = vector.shape_cast %36 : vector<128xf32> to vector<1x128xf32>
    %cst_19 = arith.constant 2.560000e+02 : f32
    %38 = vector.broadcast %cst_19 : f32 to vector<1x128xf32>
    %39 = arith.divf %37, %38 : vector<1x128xf32>
    %40 = arith.mulf %35, %35 : vector<256x128xf32>
    %cst_20 = arith.constant dense<0.000000e+00> : vector<128xf32>
    %41 = vector.multi_reduction <add>, %40, %cst_20 [0] : vector<256x128xf32> to vector<128xf32>
    %42 = vector.shape_cast %41 : vector<128xf32> to vector<1x128xf32>
    %cst_21 = arith.constant 2.560000e+02 : f32
    %43 = vector.broadcast %cst_21 : f32 to vector<1x128xf32>
    %44 = arith.divf %42, %43 : vector<1x128xf32>
    %45 = arith.mulf %39, %39 : vector<1x128xf32>
    %46 = arith.subf %44, %45 : vector<1x128xf32>
    %cst_22 = arith.constant 0.000000e+00 : f32
    %47 = vector.broadcast %cst_22 : f32 to vector<1x128xf32>
    %48 = arith.maximumf %46, %47 : vector<1x128xf32>
    %c2 = arith.constant 2 : index
    %c0_23 = arith.constant 0 : index
    %49 = vector.load %arg2[%c2, %c0_23] : memref<6x128xf32, #tpu.memory_space<vmem>>, vector<1x128xf32>
    %c3 = arith.constant 3 : index
    %c0_24 = arith.constant 0 : index
    %50 = vector.load %arg2[%c3, %c0_24] : memref<6x128xf32, #tpu.memory_space<vmem>>, vector<1x128xf32>
    %cst_25 = arith.constant 9.99999974E-6 : f32
    %51 = vector.broadcast %cst_25 : f32 to vector<1x128xf32>
    %52 = arith.addf %48, %51 : vector<1x128xf32>
    %53 = math.rsqrt %52 : vector<1x128xf32>
    %54 = arith.mulf %49, %53 : vector<1x128xf32>
    %55 = arith.mulf %39, %54 : vector<1x128xf32>
    %56 = arith.subf %50, %55 : vector<1x128xf32>
    %57 = vector.broadcast %54 : vector<1x128xf32> to vector<256x128xf32>
    %58 = arith.mulf %35, %57 : vector<256x128xf32>
    %59 = vector.broadcast %56 : vector<1x128xf32> to vector<256x128xf32>
    %60 = arith.addf %58, %59 : vector<256x128xf32>
    %cst_26 = arith.constant 0.000000e+00 : f32
    %61 = vector.broadcast %cst_26 : f32 to vector<256x128xf32>
    %62 = arith.maximumf %60, %61 : vector<256x128xf32>
    %c2_27 = arith.constant 2 : index
    %c0_28 = arith.constant 0 : index
    %c0_29 = arith.constant 0 : index
    %63 = vector.load %arg1[%c2_27, %c0_28, %c0_29] : memref<3x128x128xbf16, #tpu.memory_space<vmem>>, vector<1x128x128xbf16>
    %64 = vector.shape_cast %63 : vector<1x128x128xbf16> to vector<128x128xbf16>
    %65 = arith.truncf %62 : vector<256x128xf32> to vector<256x128xbf16>
    %cst_30 = arith.constant dense<0.000000e+00> : vector<256x128xf32>
    %66 = tpu.matmul %65, %64, %cst_30 {dimension_numbers = #tpu.dot_dimension_numbers<[1], [0], [0], [1], [0, 0, 1, 1], [], []>} : vector<256x128xbf16>, vector<128x128xbf16>, vector<256x128xf32> -> vector<256x128xf32>
    %cst_31 = arith.constant dense<0.000000e+00> : vector<128xf32>
    %67 = vector.multi_reduction <add>, %66, %cst_31 [0] : vector<256x128xf32> to vector<128xf32>
    %68 = vector.shape_cast %67 : vector<128xf32> to vector<1x128xf32>
    %cst_32 = arith.constant 2.560000e+02 : f32
    %69 = vector.broadcast %cst_32 : f32 to vector<1x128xf32>
    %70 = arith.divf %68, %69 : vector<1x128xf32>
    %71 = arith.mulf %66, %66 : vector<256x128xf32>
    %cst_33 = arith.constant dense<0.000000e+00> : vector<128xf32>
    %72 = vector.multi_reduction <add>, %71, %cst_33 [0] : vector<256x128xf32> to vector<128xf32>
    %73 = vector.shape_cast %72 : vector<128xf32> to vector<1x128xf32>
    %cst_34 = arith.constant 2.560000e+02 : f32
    %74 = vector.broadcast %cst_34 : f32 to vector<1x128xf32>
    %75 = arith.divf %73, %74 : vector<1x128xf32>
    %76 = arith.mulf %70, %70 : vector<1x128xf32>
    %77 = arith.subf %75, %76 : vector<1x128xf32>
    %cst_35 = arith.constant 0.000000e+00 : f32
    %78 = vector.broadcast %cst_35 : f32 to vector<1x128xf32>
    %79 = arith.maximumf %77, %78 : vector<1x128xf32>
    %c4 = arith.constant 4 : index
    %c0_36 = arith.constant 0 : index
    %80 = vector.load %arg2[%c4, %c0_36] : memref<6x128xf32, #tpu.memory_space<vmem>>, vector<1x128xf32>
    %c5 = arith.constant 5 : index
    %c0_37 = arith.constant 0 : index
    %81 = vector.load %arg2[%c5, %c0_37] : memref<6x128xf32, #tpu.memory_space<vmem>>, vector<1x128xf32>
    %cst_38 = arith.constant 9.99999974E-6 : f32
    %82 = vector.broadcast %cst_38 : f32 to vector<1x128xf32>
    %83 = arith.addf %79, %82 : vector<1x128xf32>
    %84 = math.rsqrt %83 : vector<1x128xf32>
    %85 = arith.mulf %80, %84 : vector<1x128xf32>
    %86 = arith.mulf %70, %85 : vector<1x128xf32>
    %87 = arith.subf %81, %86 : vector<1x128xf32>
    %88 = vector.broadcast %85 : vector<1x128xf32> to vector<256x128xf32>
    %89 = arith.mulf %66, %88 : vector<256x128xf32>
    %90 = vector.broadcast %87 : vector<1x128xf32> to vector<256x128xf32>
    %91 = arith.addf %89, %90 : vector<256x128xf32>
    %cst_39 = arith.constant 0.000000e+00 : f32
    %92 = vector.broadcast %cst_39 : f32 to vector<256x128xf32>
    %93 = arith.maximumf %91, %92 : vector<256x128xf32>
    %c0_40 = arith.constant 0 : index
    %c0_41 = arith.constant 0 : index
    %94 = vector.load %arg3[%c0_40, %c0_41] : memref<256x128xf32, #tpu.memory_space<vmem>>, vector<256x128xf32>
    tpu.vector_store %arg3[%c0_40, %c0_41], %93 {strides = array<i32>} : memref<256x128xf32, #tpu.memory_space<vmem>>, vector<256x128xf32>,
    return
  }
}

</mosaic_0001>

<bundles_post_ra>
// kernel: deepsurv_forward.1
= control target key start
LH: loop header
LB: loop body
LE: loop exit
PB: predicated region body
PF: predicated region fallthrough
CT: control target
= control target key end

     0   :  { %8 = vsyncpa [#allocation3], 0  ;;  %s2660_s0 = inlined_call_operand.hbm [shape: f32[256,128], index: 0, kind: input, shape index: {}]   ;;  %s2661_s1 = inlined_call_operand.hbm [shape: bf16[3,128,128], index: 1, kind: input, shape index: {}]   ;;  %s2662_s2 = inlined_call_operand.hbm [shape: f32[6,128], index: 2, kind: input, shape index: {}]   ;;  %s2663_s3 = inlined_call_operand.vmem [shape: f32[256,128], index: 3, kind: output, shape index: {}]  }
   0x1   :  { %9 = vsyncpa [#allocation5], 0  ;;  %s1879_s12 = smov [#allocation4]   ;;  %s1809_s16 = scalar_lea.hbm %s2661_s1, 3072 }
   0x2   :  { %s27_s13 = sshll.u32 %s1879_s12, 4  ;;  %p1810_p0 = scmp.ne.s32.totalorder %s2661_s1, %s1809_s16  ;;  %s28_s13 = int_to_ptr.vmem [resolvable:$true] %s27_s13 }
   0x3   :  { %p1813_p1 = scmp.lt.u32.totalorder %s1809_s16, %s2661_s1 }
   0x5   :  { %p1815_p2 = pnand %p1813_p1, %p1810_p0 }
   0x7   :  { %1818 = shalt.err (!%p1815_p2)
}
   0x8   :  { %s1819_s21 = scalar_lea.vmem %s28_s13, 3072  ;;  %p1824_p4 = scmp.lt.s32.totalorder %s28_s13, %s28_s13 }
   0x9   :  { %p1820_p3 = scmp.ne.s32.totalorder %s28_s13, %s1819_s21  ;;  %p1825_p5 = scmp.lt.s32.totalorder %s1819_s21, %s1819_s21 }
   0xb   :  { %p1826_p6 = por %p1825_p5, %p1824_p4 }
   0xd   :  { %p1827_p7 = pnand %p1826_p6, %p1820_p3 }
   0xf   :  { %1830 = shalt.err (!%p1827_p7)
}
  0x10   :  { %s1880_s22 = smov 64   ;;  %s1881_s23 = smov 4  }
  0x11   :  { %33 = dma.hbm_to_vmem [thread:$0]  %s2661_s1, 3072, %s28_s13, [#allocation5], %s1880_s22, %s1880_s22, %s1881_s23  }
  0x12   :  { %s1882_s26 = smov [#allocation2]   ;;  %s1831_s30 = scalar_lea.hbm %s2660_s0, 4096 }
  0x13   :  { %s15_s27 = sshll.u32 %s1882_s26, 4  ;;  %p1832_p8 = scmp.ne.s32.totalorder %s2660_s0, %s1831_s30  ;;  %s16_s27 = int_to_ptr.vmem [resolvable:$true] %s15_s27 }
  0x14   :  { %p1835_p9 = scmp.lt.u32.totalorder %s1831_s30, %s2660_s0 }
  0x16   :  { %p1837_p10 = pnand %p1835_p9, %p1832_p8 }
  0x18   :  { %1840 = shalt.err (!%p1837_p10)
}
  0x19   :  { %s1841_s8 = scalar_lea.vmem %s16_s27, 4096  ;;  %p1846_p12 = scmp.lt.s32.totalorder %s16_s27, %s16_s27 }
  0x1a   :  { %p1842_p11 = scmp.ne.s32.totalorder %s16_s27, %s1841_s8  ;;  %p1847_p13 = scmp.lt.s32.totalorder %s1841_s8, %s1841_s8 }
  0x1c   :  { %p1848_p0 = por %p1847_p13, %p1846_p12 }
  0x1e   :  { %p1849_p1 = pnand %p1848_p0, %p1842_p11 }
  0x20   :  { %1852 = shalt.err (!%p1849_p1)
}
  0x21   :  { %s1883_s1 = smov 128   ;;  %s1884_s9 = smov 8  }
  0x22   :  { %21 = dma.hbm_to_vmem [thread:$0]  %s2660_s0, 4096, %s16_s27, [#allocation3], %s1883_s1, %s1883_s1, %s1884_s9  }
  0x23   :  { %s1885_s12 = smov [#allocation6]   ;;  %s1853_s16 = scalar_lea.hbm %s2662_s2, 128 }
  0x24   :  { %s40_s13 = sshll.u32 %s1885_s12, 4  ;;  %p1854_p2 = scmp.ne.s32.totalorder %s2662_s2, %s1853_s16  ;;  %s41_s13 = int_to_ptr.vmem [resolvable:$true] %s40_s13 }
  0x25   :  { %p1857_p3 = scmp.lt.u32.totalorder %s1853_s16, %s2662_s2 }
  0x27   :  { %p1859_p4 = pnand %p1857_p3, %p1854_p2 }
  0x29   :  { %1862 = shalt.err (!%p1859_p4)
}
  0x2a   :  { %s1863_s21 = scalar_lea.vmem %s41_s13, 128  ;;  %p1868_p6 = scmp.lt.s32.totalorder %s41_s13, %s41_s13 }
  0x2b   :  { %p1864_p5 = scmp.ne.s32.totalorder %s41_s13, %s1863_s21  ;;  %p1869_p7 = scmp.lt.s32.totalorder %s1863_s21, %s1863_s21 }
  0x2d   :  { %p1870_p8 = por %p1869_p7, %p1868_p6 }
  0x2f   :  { %p1871_p9 = pnand %p1870_p8, %p1864_p5 }
  0x31   :  { %1874 = shalt.err (!%p1871_p9)
}
  0x32   :  { %43 = dma.hbm_to_vmem [thread:$0]  %s2662_s2, 128, %s41_s13, [#allocation5]  }
  0x33   :  { %1875 = dma.done.wait [#allocation3], 4096  }
  0x34   :  { %1876 = vsyncadd [#allocation3], 4294963200 }
  0x35   :  { %1877 = dma.done.wait [#allocation5], 3200  }
  0x36   :  { %1878 = vsyncadd [#allocation5], 4294964096  ;;  %v1779_v0 = vld [vmem:[#allocation4] sm:$0xff]   ;;  %v1780_v1 = vld [vmem:[#allocation4 + $0x8] sm:$0xff]  }
  0x37   :  { %1612 = vmatprep.subr.bf16.mxu0 %v1779_v0  ;;  %1756 = vmatprep.subr.bf16.mxu1 %v1779_v0  ;;  %v1781_v2 = vld [vmem:[#allocation4 + $0x10] sm:$0xff]   ;;  %v1782_v3 = vld [vmem:[#allocation4 + $0x18] sm:$0xff]   ;;  %v54_v4 = vld [vmem:[#allocation2] sm:$0xff] }
  0x38   :  { %1613 = vmatpush3.bf16.msra.mxu0 %v1779_v0  ;;  %1764 = vmatpush3.bf16.msra.mxu1 %v1779_v0  ;;  %v55_v5 = vld [vmem:[#allocation2 + $0x8] sm:$0xff]  ;;  %v1783_v7 = vld [vmem:[#allocation4 + $0x20] sm:$0xff]   ;;  %v1785_v12 = vld [vmem:[#allocation4 + $0x30] sm:$0xff]  }
  0x39   :  { %1614 = vmatprep.subr.bf16.mxu0 %v1780_v1  ;;  %1757 = vmatprep.subr.bf16.mxu1 %v1780_v1  ;;  %v102_v6 = vpack.c.bf16 %v55_v5, %v54_v4  ;;  %v70_v8 = vld [vmem:[#allocation2 + $0x80] sm:$0xff]  ;;  %v71_v9 = vld [vmem:[#allocation2 + $0x88] sm:$0xff]  ;;  %v1786_v13 = vld [vmem:[#allocation4 + $0x38] sm:$0xff]  }
  0x3a   :  { %v110_v10 = vpack.c.bf16 %v71_v9, %v70_v8  ;;  %v1784_v11 = vld [vmem:[#allocation4 + $0x28] sm:$0xff]   ;;  %v56_v14 = vld [vmem:[#allocation2 + $0x10] sm:$0xff]  ;;  %v57_v15 = vld [vmem:[#allocation2 + $0x18] sm:$0xff] }
  0x3b   :  { %1628 = vmatprep.mubr.bf16.mxu0 %v102_v6  ;;  %v58_v16 = vld [vmem:[#allocation2 + $0x20] sm:$0xff]  ;;  %v59_v17 = vld [vmem:[#allocation2 + $0x28] sm:$0xff]  ;;  %v72_v18 = vld [vmem:[#allocation2 + $0x90] sm:$0xff]  ;;  %v103_v22 = vpack.c.bf16 %v57_v15, %v56_v14 }
  0x3c   :  { %1615 = vmatpush3.bf16.msra.mxu0 %v1780_v1  ;;  %1765 = vmatpush3.bf16.msra.mxu1 %v1780_v1  ;;  %v73_v19 = vld [vmem:[#allocation2 + $0x98] sm:$0xff]  ;;  %v74_v20 = vld [vmem:[#allocation2 + $0xa0] sm:$0xff]  ;;  %v75_v21 = vld [vmem:[#allocation2 + $0xa8] sm:$0xff]  ;;  %v104_v23 = vpack.c.bf16 %v59_v17, %v58_v16 }
  0x3d   :  { %1616 = vmatprep.subr.bf16.mxu0 %v1781_v2  ;;  %1758 = vmatprep.subr.bf16.mxu1 %v1781_v2  ;;  %v111_v24 = vpack.c.bf16 %v73_v19, %v72_v18  ;;  %v112_v25 = vpack.c.bf16 %v75_v21, %v74_v20  ;;  %v60_v26 = vld [vmem:[#allocation2 + $0x30] sm:$0xff]  ;;  %v61_v27 = vld [vmem:[#allocation2 + $0x38] sm:$0xff]  ;;  %v62_v28 = vld [vmem:[#allocation2 + $0x40] sm:$0xff] }
  0x3e   :  { %1644 = vmatprep.mubr.bf16.mxu1 %v110_v10  ;;  %v63_v29 = vld [vmem:[#allocation2 + $0x48] sm:$0xff]  ;;  %v76_v30 = vld [vmem:[#allocation2 + $0xb0] sm:$0xff]  ;;  %v77_v31 = vld [vmem:[#allocation2 + $0xb8] sm:$0xff]  ;;  %v105_v34 = vpack.c.bf16 %v61_v27, %v60_v26 }
  0x3f   :  { %v78_v32 = vld [vmem:[#allocation2 + $0xc0] sm:$0xff]  ;;  %v79_v33 = vld [vmem:[#allocation2 + $0xc8] sm:$0xff]  ;;  %v106_v35 = vpack.c.bf16 %v63_v29, %v62_v28  ;;  %v113_v36 = vpack.c.bf16 %v77_v31, %v76_v30  ;;  %v64_v38 = vld [vmem:[#allocation2 + $0x50] sm:$0xff] }
  0x40   :  { %1617 = vmatpush3.bf16.msra.mxu0 %v1781_v2  ;;  %1766 = vmatpush3.bf16.msra.mxu1 %v1781_v2  ;;  %v114_v37 = vpack.c.bf16 %v79_v33, %v78_v32  ;;  %v65_v39 = vld [vmem:[#allocation2 + $0x58] sm:$0xff]  ;;  %v66_v40 = vld [vmem:[#allocation2 + $0x60] sm:$0xff]  ;;  %v67_v41 = vld [vmem:[#allocation2 + $0x68] sm:$0xff] }
  0x41   :  { %1618 = vmatprep.subr.bf16.mxu0 %v1782_v3  ;;  %1759 = vmatprep.subr.bf16.mxu1 %v1782_v3  ;;  %v80_v42 = vld [vmem:[#allocation2 + $0xd0] sm:$0xff]  ;;  %v81_v43 = vld [vmem:[#allocation2 + $0xd8] sm:$0xff]  ;;  %v82_v44 = vld [vmem:[#allocation2 + $0xe0] sm:$0xff]  ;;  %v107_v46 = vpack.c.bf16 %v65_v39, %v64_v38  ;;  %v108_v47 = vpack.c.bf16 %v67_v41, %v66_v40 }
  0x42   :  { %v83_v45 = vld [vmem:[#allocation2 + $0xe8] sm:$0xff]  ;;  %v115_v48 = vpack.c.bf16 %v81_v43, %v80_v42  ;;  %v68_v50 = vld [vmem:[#allocation2 + $0x70] sm:$0xff]  ;;  %v69_v51 = vld [vmem:[#allocation2 + $0x78] sm:$0xff] }
  0x43   :  { %v116_v49 = vpack.c.bf16 %v83_v45, %v82_v44  ;;  %v84_v52 = vld [vmem:[#allocation2 + $0xf0] sm:$0xff]  ;;  %v85_v53 = vld [vmem:[#allocation2 + $0xf8] sm:$0xff]  ;;  %v109_v54 = vpack.c.bf16 %v69_v51, %v68_v50  ;;  %v1787_v56 = vld [vmem:[#allocation4 + $0x40] sm:$0xff]  }
  0x44   :  { %1619 = vmatpush3.bf16.msra.mxu0 %v1782_v3  ;;  %1767 = vmatpush3.bf16.msra.mxu1 %v1782_v3  ;;  %v117_v55 = vpack.c.bf16 %v85_v53, %v84_v52  ;;  %v1788_v57 = vld [vmem:[#allocation4 + $0x48] sm:$0xff]   ;;  %v1789_v58 = vld [vmem:[#allocation4 + $0x50] sm:$0xff]   ;;  %v1790_v59 = vld [vmem:[#allocation4 + $0x58] sm:$0xff]  }
  0x45   :  { %1620 = vmatprep.subr.bf16.mxu0 %v1783_v7  ;;  %1760 = vmatprep.subr.bf16.mxu1 %v1783_v7  ;;  %v1791_v60 = vld [vmem:[#allocation4 + $0x60] sm:$0xff]   ;;  %v1792_v61 = vld [vmem:[#allocation4 + $0x68] sm:$0xff]   ;;  %v1793_v62 = vld [vmem:[#allocation4 + $0x70] sm:$0xff]  }
  0x46   :  { %v1794_v63 = vld [vmem:[#allocation4 + $0x78] sm:$0xff]  }
  0x48   :  { %1621 = vmatpush3.bf16.msra.mxu0 %v1783_v7  ;;  %1768 = vmatpush3.bf16.msra.mxu1 %v1783_v7 }
  0x49   :  { %1622 = vmatprep.subr.bf16.mxu0 %v1784_v11  ;;  %1761 = vmatprep.subr.bf16.mxu1 %v1784_v11 }
  0x4c   :  { %1623 = vmatpush3.bf16.msra.mxu0 %v1784_v11  ;;  %1769 = vmatpush3.bf16.msra.mxu1 %v1784_v11 }
  0x4d   :  { %1624 = vmatprep.subr.bf16.mxu0 %v1785_v12  ;;  %1762 = vmatprep.subr.bf16.mxu1 %v1785_v12 }
  0x50   :  { %1625 = vmatpush3.bf16.msra.mxu0 %v1785_v12  ;;  %1770 = vmatpush3.bf16.msra.mxu1 %v1785_v12 }
  0x51   :  { %1626 = vmatprep.subr.bf16.mxu0 %v1786_v13  ;;  %1763 = vmatprep.subr.bf16.mxu1 %v1786_v13 }
  0x54   :  { %1627 = vmatpush3.bf16.msra.mxu0 %v1786_v13  ;;  %1771 = vmatpush3.bf16.msra.mxu1 %v1786_v13 }
  0x55   :  { %1660 = vmatprep.subr.bf16.mxu1 %v1787_v56 }
  0x57   :  { %1629 = vmatmul.mubr.bf16.vlgmr.msra.gmra.mrb[0].mxu0 %v103_v22  ;;  %1645 = vmatmul.mubr.bf16.vlgmr.msra.gmra.mrb[0].mxu1 %v111_v24 }
  0x58   :  { %1632 = vmatprep.mubr.bf16.mxu0 %v104_v23  ;;  %1648 = vmatprep.mubr.bf16.mxu1 %v112_v25 }
  0x59   :  { %1661 = vmatpush3.bf16.msra.mxu1 %v1787_v56 }
  0x5a   :  { %1662 = vmatprep.subr.bf16.mxu1 %v1788_v57 }
  0x5d   :  { %1663 = vmatpush3.bf16.msra.mxu1 %v1788_v57 }
  0x5e   :  { %1664 = vmatprep.subr.bf16.mxu1 %v1789_v58 }
  0x5f   :  { %1633 = vmatmul.mubr.bf16.gmra.mrb[4].mxu0 %v105_v34  ;;  %1649 = vmatmul.mubr.bf16.gmra.mrb[4].mxu1 %v113_v36 }
  0x60   :  { %1636 = vmatprep.mubr.bf16.mxu0 %v106_v35  ;;  %1652 = vmatprep.mubr.bf16.mxu1 %v114_v37 }
  0x61   :  { %1665 = vmatpush3.bf16.msra.mxu1 %v1789_v58 }
  0x62   :  { %1666 = vmatprep.subr.bf16.mxu1 %v1790_v59 }
  0x65   :  { %1667 = vmatpush3.bf16.msra.mxu1 %v1790_v59 }
  0x66   :  { %1668 = vmatprep.subr.bf16.mxu1 %v1791_v60 }
  0x67   :  { %1637 = vmatmul.mubr.bf16.gmra.mrb[8].mxu0 %v107_v46  ;;  %1653 = vmatmul.mubr.bf16.gmra.mrb[8].mxu1 %v115_v48 }
  0x68   :  { %1640 = vmatprep.mubr.bf16.mxu0 %v108_v47  ;;  %1656 = vmatprep.mubr.bf16.mxu1 %v116_v49 }
  0x69   :  { %1669 = vmatpush3.bf16.msra.mxu1 %v1791_v60 }
  0x6a   :  { %1670 = vmatprep.subr.bf16.mxu1 %v1792_v61 }
  0x6d   :  { %1671 = vmatpush3.bf16.msra.mxu1 %v1792_v61 }
  0x6e   :  { %1672 = vmatprep.subr.bf16.mxu1 %v1793_v62 }
  0x6f   :  { %1641 = vmatmul.mubr.bf16.gmra.mrb[12].mxu0 %v109_v54  ;;  %1657 = vmatmul.mubr.bf16.gmra.mrb[12].mxu1 %v117_v55 }
  0x71   :  { %1673 = vmatpush3.bf16.msra.mxu1 %v1793_v62 }
  0x72   :  { %1674 = vmatprep.subr.bf16.mxu1 %v1794_v63 }
  0x75   :  { %1675 = vmatpush3.bf16.msra.mxu1 %v1794_v63 }
 0x12a   :  { %v1942_v0 = vpop.f32.mrb[0].mxu0  ;;  %v1946_v2 = vpop.f32.mrb[0].mxu1 }
 0x12b   :  { %v1944_v1 = vpop.f32.mrb[1].mxu0  ;;  %v1950_v4 = vpop.f32.mrb[1].mxu1  ;;  %v368_v11 = vmul.f32 %v1942_v0, %v1942_v0 }
 0x12c   :  { %v1948_v3 = vpop.f32.mrb[2].mxu0  ;;  %v1954_v6 = vpop.f32.mrb[2].mxu1  ;;  %v366_v7 = vmul.f32 %v1944_v1, %v1944_v1 }
 0x12d   :  { %v1952_v5 = vpop.f32.mrb[3].mxu0  ;;  %v1962_v10 = vpop.f32.mrb[3].mxu1  ;;  %v369_v14 = vmul.f32 %v1948_v3, %v1948_v3 }
 0x12e   :  { %v327_v8 = vadd.f32 %v1952_v5, %v1944_v1  ;;  %v367_v9 = vmul.f32 %v1952_v5, %v1952_v5 }
 0x130   :  { %v328_v12 = vadd.f32 %v1942_v0, %v327_v8  ;;  %v398_v13 = vadd.f32 %v367_v9, %v366_v7 }
 0x132   :  { %v399_v15 = vadd.f32 %v398_v13, %v368_v11  ;;  %v1969_v16 = vpop.f32.mrb[4].mxu0  ;;  %v329_v17 = vadd.f32 %v1948_v3, %v328_v12  ;;  %v1974_v19 = vpop.f32.mrb[4].mxu1 }
 0x133   :  { %v1972_v18 = vpop.f32.mrb[5].mxu0  ;;  %v1981_v24 = vpop.f32.mrb[5].mxu1  ;;  %v372_v31 = vmul.f32 %v1969_v16, %v1969_v16 }
 0x134   :  { %v330_v20 = vadd.f32 %v329_v17, %v1972_v18  ;;  %v370_v21 = vmul.f32 %v1972_v18, %v1972_v18  ;;  %v400_v22 = vadd.f32 %v399_v15, %v369_v14  ;;  %v1979_v23 = vpop.f32.mrb[6].mxu0  ;;  %v1985_v26 = vpop.f32.mrb[6].mxu1 }
 0x135   :  { %v1983_v25 = vpop.f32.mrb[7].mxu0  ;;  %v1990_v30 = vpop.f32.mrb[7].mxu1  ;;  %v373_v34 = vmul.f32 %v1979_v23, %v1979_v23 }
 0x136   :  { %v401_v27 = vadd.f32 %v400_v22, %v370_v21  ;;  %v331_v28 = vadd.f32 %v330_v20, %v1983_v25  ;;  %v371_v29 = vmul.f32 %v1983_v25, %v1983_v25 }
 0x138   :  { %v332_v32 = vadd.f32 %v1969_v16, %v331_v28  ;;  %v402_v33 = vadd.f32 %v401_v27, %v371_v29  ;;  %v382_v28 = vmul.f32 %v1950_v4, %v1950_v4 }
 0x13a   :  { %v403_v35 = vadd.f32 %v402_v33, %v372_v31  ;;  %v1997_v36 = vpop.f32.mrb[8].mxu0  ;;  %v333_v37 = vadd.f32 %v1979_v23, %v332_v32  ;;  %v2002_v39 = vpop.f32.mrb[8].mxu1 }
 0x13b   :  { %v2000_v38 = vpop.f32.mrb[9].mxu0  ;;  %v2009_v44 = vpop.f32.mrb[9].mxu1  ;;  %v376_v51 = vmul.f32 %v1997_v36, %v1997_v36 }
 0x13c   :  { %v334_v40 = vadd.f32 %v333_v37, %v2000_v38  ;;  %v374_v41 = vmul.f32 %v2000_v38, %v2000_v38  ;;  %v404_v42 = vadd.f32 %v403_v35, %v373_v34  ;;  %v2007_v43 = vpop.f32.mrb[10].mxu0  ;;  %v2013_v46 = vpop.f32.mrb[10].mxu1  ;;  %v383_v34 = vmul.f32 %v1962_v10, %v1962_v10 }
 0x13d   :  { %v2011_v45 = vpop.f32.mrb[11].mxu0  ;;  %v2018_v50 = vpop.f32.mrb[11].mxu1  ;;  %v377_v54 = vmul.f32 %v2007_v43, %v2007_v43  ;;  %v384_v35 = vmul.f32 %v1946_v2, %v1946_v2 }
 0x13e   :  { %v405_v47 = vadd.f32 %v404_v42, %v374_v41  ;;  %v335_v48 = vadd.f32 %v334_v40, %v2011_v45  ;;  %v375_v49 = vmul.f32 %v2011_v45, %v2011_v45  ;;  %v385_v41 = vmul.f32 %v1954_v6, %v1954_v6 }
 0x140   :  { %v336_v52 = vadd.f32 %v1997_v36, %v335_v48  ;;  %v406_v53 = vadd.f32 %v405_v47, %v375_v49  ;;  %v386_v48 = vmul.f32 %v1981_v24, %v1981_v24 }
 0x142   :  { %v407_v55 = vadd.f32 %v406_v53, %v376_v51  ;;  %v2025_v56 = vpop.f32.mrb[12].mxu0  ;;  %v337_v57 = vadd.f32 %v2007_v43, %v336_v52  ;;  %v2030_v59 = vpop.f32.mrb[12].mxu1 }
 0x143   :  { %v2028_v58 = vpop.f32.mrb[13].mxu0  ;;  %v2037_v7 = vpop.f32.mrb[13].mxu1  ;;  %v380_v15 = vmul.f32 %v2025_v56, %v2025_v56 }
 0x144   :  { %v338_v60 = vadd.f32 %v337_v57, %v2028_v58  ;;  %v378_v61 = vmul.f32 %v2028_v58, %v2028_v58  ;;  %v408_v62 = vadd.f32 %v407_v55, %v377_v54  ;;  %v2035_v63 = vpop.f32.mrb[14].mxu0  ;;  %v2041_v9 = vpop.f32.mrb[14].mxu1  ;;  %v387_v54 = vmul.f32 %v1990_v30, %v1990_v30 }
 0x145   :  { %v2039_v8 = vpop.f32.mrb[15].mxu0  ;;  %v2046_v14 = vpop.f32.mrb[15].mxu1  ;;  %v381_v21 = vmul.f32 %v2035_v63, %v2035_v63  ;;  %v388_v55 = vmul.f32 %v1974_v19, %v1974_v19 }
 0x146   :  { %v409_v11 = vadd.f32 %v408_v62, %v378_v61  ;;  %v339_v12 = vadd.f32 %v338_v60, %v2039_v8  ;;  %v379_v13 = vmul.f32 %v2039_v8, %v2039_v8  ;;  %v389_v61 = vmul.f32 %v1985_v26, %v1985_v26 }
 0x148   :  { %v340_v17 = vadd.f32 %v2025_v56, %v339_v12  ;;  %v410_v20 = vadd.f32 %v409_v11, %v379_v13  ;;  %v390_v12 = vmul.f32 %v2009_v44, %v2009_v44 }
 0x14a   :  { %v411_v22 = vadd.f32 %v410_v20, %v380_v15  ;;  %v341_v27 = vadd.f32 %v2035_v63, %v340_v17 }
 0x14c   :  { %v342_v29 = vadd.f32 %v341_v27, %v1950_v4  ;;  %v412_v31 = vadd.f32 %v411_v22, %v381_v21  ;;  %v391_v21 = vmul.f32 %v2018_v50, %v2018_v50  ;;  %v392_v22 = vmul.f32 %v2002_v39, %v2002_v39 }
 0x14e   :  { %v413_v32 = vadd.f32 %v412_v31, %v382_v28  ;;  %v343_v33 = vadd.f32 %v342_v29, %v1962_v10  ;;  %v393_v29 = vmul.f32 %v2013_v46, %v2013_v46 }
 0x150   :  { %v344_v37 = vadd.f32 %v1946_v2, %v343_v33  ;;  %v414_v40 = vadd.f32 %v413_v32, %v383_v34  ;;  %v394_v33 = vmul.f32 %v2037_v7, %v2037_v7 }
 0x152   :  { %v415_v42 = vadd.f32 %v414_v40, %v384_v35  ;;  %v345_v47 = vadd.f32 %v1954_v6, %v344_v37 }
 0x154   :  { %v346_v49 = vadd.f32 %v345_v47, %v1981_v24  ;;  %v416_v51 = vadd.f32 %v415_v42, %v385_v41  ;;  %v395_v41 = vmul.f32 %v2046_v14, %v2046_v14  ;;  %v396_v42 = vmul.f32 %v2030_v59, %v2030_v59 }
 0x156   :  { %v417_v52 = vadd.f32 %v416_v51, %v386_v48  ;;  %v347_v53 = vadd.f32 %v346_v49, %v1990_v30  ;;  %v397_v49 = vmul.f32 %v2041_v9, %v2041_v9 }
 0x158   :  { %v348_v57 = vadd.f32 %v1974_v19, %v347_v53  ;;  %v418_v60 = vadd.f32 %v417_v52, %v387_v54 }
 0x15a   :  { %v419_v62 = vadd.f32 %v418_v60, %v388_v55  ;;  %v349_v11 = vadd.f32 %v1985_v26, %v348_v57 }
 0x15c   :  { %v350_v13 = vadd.f32 %v349_v11, %v2009_v44  ;;  %v420_v15 = vadd.f32 %v419_v62, %v389_v61 }
 0x15e   :  { %v421_v17 = vadd.f32 %v420_v15, %v390_v12  ;;  %v351_v20 = vadd.f32 %v350_v13, %v2018_v50 }
 0x160   :  { %v352_v27 = vadd.f32 %v2002_v39, %v351_v20  ;;  %v422_v28 = vadd.f32 %v421_v17, %v391_v21 }
 0x162   :  { %v423_v31 = vadd.f32 %v422_v28, %v392_v22  ;;  %v353_v32 = vadd.f32 %v2013_v46, %v352_v27 }
 0x164   :  { %v354_v34 = vadd.f32 %v353_v32, %v2037_v7  ;;  %v424_v35 = vadd.f32 %v423_v31, %v393_v29  ;;  %v446_v32 = vlaneseq }
 0x166   :  { %v425_v37 = vadd.f32 %v424_v35, %v394_v33  ;;  %v355_v40 = vadd.f32 %v354_v34, %v2046_v14  ;;  %v447_v33 = vshrl.u32 %v446_v32, 7  ;;  %v439_v34 = vld [vmem:[#allocation6] sm:$0x1] }
 0x168   :  { %v356_v47 = vadd.f32 %v2030_v59, %v355_v40  ;;  %v426_v48 = vadd.f32 %v425_v37, %v395_v41  ;;  %v2102_v35 = vsub.s32 0, %v447_v33  ;;  %v440_v41 = vld [vmem:[#allocation6 + $0x1] sm:$0x1] }
 0x16a   :  { %v357_v51 = vadd.f32 %v2041_v9, %v356_v47  ;;  %v427_v52 = vadd.f32 %v426_v48, %v396_v42 }
 0x16c   :  { %v358_v53 = vrot.slane %v357_v51, 4  ;;  %v428_v54 = vadd.f32 %v427_v52, %v397_v49 }
 0x16e   :  { %v359_v55 = vadd.f32 %v358_v53, %v357_v51  ;;  %v429_v57 = vrot.slane %v428_v54, 4 }
 0x170   :  { %v360_v60 = vrot.slane %v359_v55, 2  ;;  %v430_v61 = vadd.f32 %v429_v57, %v428_v54 }
 0x172   :  { %v361_v62 = vadd.f32 %v360_v60, %v359_v55  ;;  %v431_v11 = vrot.slane %v430_v61, 2 }
 0x174   :  { %v362_v12 = vrot.slane %v361_v62, 1  ;;  %v432_v13 = vadd.f32 %v431_v11, %v430_v61 }
 0x176   :  { %v363_v15 = vadd.f32 %v362_v12, %v361_v62  ;;  %v433_v17 = vrot.slane %v432_v13, 1 }
 0x178   :  { %v365_v20 = vmul.f32 0.00390625, %v363_v15  ;;  %v434_v21 = vadd.f32 %v433_v17, %v432_v13 }
 0x17a   :  { %v435_v22 = vmul.f32 0.00390625, %v434_v21  ;;  %v436_v27 = vmul.f32 %v365_v20, %v365_v20 }
 0x17c   :  { %v437_v28 = vsub.f32 %v435_v22, %v436_v27 }
 0x17e   :  { %v438_v29 = vmax.f32 %v437_v28, 0.0 }
 0x180   :  { %v441_v31 = vadd.f32 1e-05, %v438_v29 }
 0x182   :  { %1803 = vrsqrt.f32 %v441_v31 }
 0x18c   :  { %v1804_v37 = vpop.eup %1803 }
 0x18d   :  { %v443_v40 = vmul.f32 %v1804_v37, %v439_v34 }
 0x18f   :  { %v444_v42 = vmul.f32 %v443_v40, %v365_v20  ;;  %v449_v47 = vrot.slane %v443_v40, %v2102_v35 }
 0x191   :  { %v445_v48 = vsub.f32 %v440_v41, %v444_v42  ;;  %v479_v49 = vmul.f32 %v449_v47, %v2046_v14  ;;  %v450_v51 = vmul.f32 %v449_v47, %v1944_v1  ;;  %v451_v52 = vmul.f32 %v449_v47, %v1952_v5 }
 0x192   :  { %v452_v53 = vmul.f32 %v1942_v0, %v449_v47  ;;  %v453_v54 = vmul.f32 %v1948_v3, %v449_v47  ;;  %v454_v55 = vmul.f32 %v449_v47, %v1972_v18  ;;  %v455_v57 = vmul.f32 %v449_v47, %v1983_v25 }
 0x193   :  { %v485_v60 = vrot.slane %v445_v48, %v2102_v35  ;;  %v456_v61 = vmul.f32 %v1969_v16, %v449_v47  ;;  %v457_v62 = vmul.f32 %v1979_v23, %v449_v47  ;;  %v458_v14 = vmul.f32 %v449_v47, %v2000_v38 }
 0x194   :  { %v459_v1 = vmul.f32 %v449_v47, %v2011_v45  ;;  %v460_v5 = vmul.f32 %v1997_v36, %v449_v47  ;;  %v461_v0 = vmul.f32 %v2007_v43, %v449_v47  ;;  %v462_v3 = vmul.f32 %v449_v47, %v2028_v58 }
 0x195   :  { %v2120_v11 = vadd.f32 %v485_v60, %v479_v49  ;;  %v463_v18 = vmul.f32 %v449_v47, %v2039_v8  ;;  %v464_v25 = vmul.f32 %v2025_v56, %v449_v47  ;;  %v465_v16 = vmul.f32 %v2035_v63, %v449_v47 }
 0x196   :  { %v466_v23 = vmul.f32 %v449_v47, %v1950_v4  ;;  %v467_v38 = vmul.f32 %v449_v47, %v1962_v10  ;;  %v468_v45 = vmul.f32 %v1946_v2, %v449_v47  ;;  %v469_v36 = vmul.f32 %v1954_v6, %v449_v47 }
 0x197   :  { %v470_v43 = vmul.f32 %v449_v47, %v1981_v24  ;;  %v471_v58 = vmul.f32 %v449_v47, %v1990_v30  ;;  %v472_v12 = vmul.f32 %v1974_v19, %v449_v47  ;;  %v473_v8 = vmul.f32 %v1985_v26, %v449_v47 }
 0x198   :  { %v474_v56 = vmul.f32 %v449_v47, %v2009_v44  ;;  %v475_v63 = vmul.f32 %v449_v47, %v2018_v50  ;;  %v476_v4 = vmul.f32 %v2002_v39, %v449_v47  ;;  %v477_v10 = vmul.f32 %v2013_v46, %v449_v47 }
 0x199   :  { %v478_v2 = vmul.f32 %v449_v47, %v2037_v7  ;;  %v480_v6 = vmul.f32 %v2030_v59, %v449_v47  ;;  %v481_v24 = vmul.f32 %v2041_v9, %v449_v47  ;;  %v486_v13 = vadd.f32 %v485_v60, %v450_v51 }
 0x19a   :  { %v487_v30 = vadd.f32 %v485_v60, %v451_v52  ;;  %v488_v15 = vadd.f32 %v485_v60, %v452_v53  ;;  %v489_v19 = vadd.f32 %v485_v60, %v453_v54  ;;  %v490_v17 = vadd.f32 %v485_v60, %v454_v55 }
 0x19b   :  { %v491_v26 = vadd.f32 %v485_v60, %v455_v57  ;;  %v492_v20 = vadd.f32 %v485_v60, %v456_v61  ;;  %v493_v44 = vadd.f32 %v485_v60, %v457_v62  ;;  %v494_v21 = vadd.f32 %v485_v60, %v458_v14 }
 0x19c   :  { %v495_v50 = vadd.f32 %v485_v60, %v459_v1  ;;  %v496_v22 = vadd.f32 %v485_v60, %v460_v5  ;;  %v497_v39 = vadd.f32 %v485_v60, %v461_v0  ;;  %v498_v27 = vadd.f32 %v485_v60, %v462_v3 }
 0x19d   :  { %v499_v46 = vadd.f32 %v485_v60, %v463_v18  ;;  %v500_v28 = vadd.f32 %v485_v60, %v464_v25  ;;  %v501_v7 = vadd.f32 %v485_v60, %v465_v16  ;;  %v502_v29 = vadd.f32 %v485_v60, %v466_v23 }
 0x19e   :  { %v503_v59 = vadd.f32 %v485_v60, %v467_v38  ;;  %v504_v31 = vadd.f32 %v485_v60, %v468_v45  ;;  %v505_v9 = vadd.f32 %v485_v60, %v469_v36  ;;  %v506_v32 = vadd.f32 %v485_v60, %v470_v43 }
 0x19f   :  { %v507_v33 = vadd.f32 %v485_v60, %v471_v58  ;;  %v508_v34 = vadd.f32 %v485_v60, %v472_v12  ;;  %v509_v37 = vadd.f32 %v485_v60, %v473_v8  ;;  %v510_v40 = vadd.f32 %v485_v60, %v474_v56 }
 0x1a0   :  { %v511_v41 = vadd.f32 %v485_v60, %v475_v63  ;;  %v512_v42 = vadd.f32 %v485_v60, %v476_v4  ;;  %v513_v47 = vadd.f32 %v485_v60, %v477_v10  ;;  %v514_v48 = vadd.f32 %v485_v60, %v478_v2 }
 0x1a1   :  { %v516_v49 = vadd.f32 %v485_v60, %v480_v6  ;;  %v517_v51 = vadd.f32 %v485_v60, %v481_v24  ;;  %v520_v52 = vmax.f32 %v488_v15, 0.0  ;;  %v521_v53 = vmax.f32 %v489_v19, 0.0 }
 0x1a2   :  { %v518_v54 = vmax.f32 %v486_v13, 0.0  ;;  %v519_v55 = vmax.f32 %v487_v30, 0.0  ;;  %v522_v57 = vmax.f32 %v490_v17, 0.0  ;;  %v523_v61 = vmax.f32 %v491_v26, 0.0 }
 0x1a3   :  { %v568_v62 = vpack.c.bf16 %v521_v53, %v520_v52  ;;  %v524_v14 = vmax.f32 %v492_v20, 0.0  ;;  %v525_v1 = vmax.f32 %v493_v44, 0.0  ;;  %v526_v5 = vmax.f32 %v494_v21, 0.0 }
 0x1a4   :  { %v567_v0 = vpack.c.bf16 %v519_v55, %v518_v54  ;;  %v569_v3 = vpack.c.bf16 %v523_v61, %v522_v57  ;;  %v527_v18 = vmax.f32 %v495_v50, 0.0  ;;  %v528_v25 = vmax.f32 %v496_v22, 0.0 }
 0x1a5   :  { %v570_v16 = vpack.c.bf16 %v525_v1, %v524_v14  ;;  %v529_v23 = vmax.f32 %v497_v39, 0.0  ;;  %v530_v38 = vmax.f32 %v498_v27, 0.0  ;;  %v531_v45 = vmax.f32 %v499_v46, 0.0 }
 0x1a6   :  { %1676 = vmatprep.mubr.bf16.mxu1 %v567_v0  ;;  %v571_v60 = vpack.c.bf16 %v527_v18, %v526_v5  ;;  %v532_v36 = vmax.f32 %v500_v28, 0.0  ;;  %v533_v43 = vmax.f32 %v501_v7, 0.0  ;;  %v534_v58 = vmax.f32 %v502_v29, 0.0 }
 0x1a7   :  { %1677 = vmatmul.mubr.bf16.vlgmr.msra.gmra.mrb[16].mxu1 %v568_v62  ;;  %v572_v12 = vpack.c.bf16 %v529_v23, %v528_v25  ;;  %v573_v8 = vpack.c.bf16 %v531_v45, %v530_v38  ;;  %v535_v56 = vmax.f32 %v503_v59, 0.0  ;;  %v536_v63 = vmax.f32 %v504_v31, 0.0  ;;  %v1796_v59 = vld [vmem:[#allocation4 + $0x88] sm:$0xff]   ;;  %v1797_v31 = vld [vmem:[#allocation4 + $0x90] sm:$0xff]  }
 0x1a8   :  { %1680 = vmatprep.mubr.bf16.mxu1 %v569_v3  ;;  %v574_v4 = vpack.c.bf16 %v533_v43, %v532_v36  ;;  %v537_v10 = vmax.f32 %v505_v9, 0.0  ;;  %v538_v2 = vmax.f32 %v506_v32, 0.0  ;;  %v539_v6 = vmax.f32 %v507_v33, 0.0  ;;  %v1798_v9 = vld [vmem:[#allocation4 + $0x98] sm:$0xff]   ;;  %v1799_v32 = vld [vmem:[#allocation4 + $0xa0] sm:$0xff]   ;;  %v1800_v33 = vld [vmem:[#allocation4 + $0xa8] sm:$0xff]  }
 0x1a9   :  { %v575_v24 = vpack.c.bf16 %v535_v56, %v534_v58  ;;  %v540_v13 = vmax.f32 %v508_v34, 0.0  ;;  %v541_v30 = vmax.f32 %v509_v37, 0.0  ;;  %v542_v15 = vmax.f32 %v510_v40, 0.0  ;;  %v1801_v34 = vld [vmem:[#allocation4 + $0xb0] sm:$0xff]   ;;  %v1802_v37 = vld [vmem:[#allocation4 + $0xb8] sm:$0xff]  }
 0x1aa   :  { %v576_v19 = vpack.c.bf16 %v537_v10, %v536_v63  ;;  %v577_v17 = vpack.c.bf16 %v539_v6, %v538_v2  ;;  %v543_v26 = vmax.f32 %v511_v41, 0.0  ;;  %v544_v20 = vmax.f32 %v512_v42, 0.0 }
 0x1ab   :  { %v578_v44 = vpack.c.bf16 %v541_v30, %v540_v13  ;;  %v545_v21 = vmax.f32 %v513_v47, 0.0  ;;  %v546_v50 = vmax.f32 %v514_v48, 0.0  ;;  %v547_v22 = vmax.f32 %v2120_v11, 0.0  ;;  %v1795_v11 = vld [vmem:[#allocation4 + $0x80] sm:$0xff]  }
 0x1ac   :  { %v579_v39 = vpack.c.bf16 %v543_v26, %v542_v15  ;;  %v548_v27 = vmax.f32 %v516_v49, 0.0  ;;  %v549_v46 = vmax.f32 %v517_v51, 0.0  ;;  %1708 = vmatprep.subr.bf16.mxu0 %v1795_v11 }
 0x1ad   :  { %v580_v28 = vpack.c.bf16 %v545_v21, %v544_v20  ;;  %v581_v7 = vpack.c.bf16 %v547_v22, %v546_v50  ;;  %1709 = vmatpush3.bf16.msra.mxu0 %v1795_v11 }
 0x1ae   :  { %v582_v29 = vpack.c.bf16 %v549_v46, %v548_v27  ;;  %1710 = vmatprep.subr.bf16.mxu0 %v1796_v59 }
 0x1af   :  { %1681 = vmatmul.mubr.bf16.gmra.mrb[20].mxu1 %v570_v16 }
 0x1b0   :  { %1684 = vmatprep.mubr.bf16.mxu1 %v571_v60 }
 0x1b1   :  { %1711 = vmatpush3.bf16.msra.mxu0 %v1796_v59 }
 0x1b2   :  { %1712 = vmatprep.subr.bf16.mxu0 %v1797_v31 }
 0x1b5   :  { %1713 = vmatpush3.bf16.msra.mxu0 %v1797_v31 }
 0x1b6   :  { %1714 = vmatprep.subr.bf16.mxu0 %v1798_v9 }
 0x1b7   :  { %1685 = vmatmul.mubr.bf16.gmra.mrb[24].mxu1 %v572_v12 }
 0x1b8   :  { %1688 = vmatprep.mubr.bf16.mxu1 %v573_v8 }
 0x1b9   :  { %1715 = vmatpush3.bf16.msra.mxu0 %v1798_v9 }
 0x1ba   :  { %1716 = vmatprep.subr.bf16.mxu0 %v1799_v32 }
 0x1bd   :  { %1717 = vmatpush3.bf16.msra.mxu0 %v1799_v32 }
 0x1be   :  { %1718 = vmatprep.subr.bf16.mxu0 %v1800_v33 }
 0x1bf   :  { %1689 = vmatmul.mubr.bf16.gmra.mrb[28].mxu1 %v574_v4 }
 0x1c0   :  { %1692 = vmatprep.mubr.bf16.mxu1 %v575_v24 }
 0x1c1   :  { %1719 = vmatpush3.bf16.msra.mxu0 %v1800_v33 }
 0x1c2   :  { %1720 = vmatprep.subr.bf16.mxu0 %v1801_v34 }
 0x1c5   :  { %1721 = vmatpush3.bf16.msra.mxu0 %v1801_v34 }
 0x1c6   :  { %1722 = vmatprep.subr.bf16.mxu0 %v1802_v37 }
 0x1c7   :  { %1693 = vmatmul.mubr.bf16.gmra.mrb[32].mxu1 %v576_v19 }
 0x1c8   :  { %1696 = vmatprep.mubr.bf16.mxu1 %v577_v17 }
 0x1c9   :  { %1723 = vmatpush3.bf16.msra.mxu0 %v1802_v37 }
 0x1cf   :  { %1697 = vmatmul.mubr.bf16.gmra.mrb[36].mxu1 %v578_v44 }
 0x1d0   :  { %1700 = vmatprep.mubr.bf16.mxu1 %v579_v39 }
 0x1d7   :  { %1701 = vmatmul.mubr.bf16.gmra.mrb[40].mxu1 %v580_v28 }
 0x1d8   :  { %1704 = vmatprep.mubr.bf16.mxu1 %v581_v7 }
 0x1df   :  { %1705 = vmatmul.mubr.bf16.gmra.mrb[44].mxu1 %v582_v29 }
 0x27a   :  { %v2141_v40 = vpop.f32.mrb[16].mxu1 }
 0x27b   :  { %v2143_v41 = vpop.f32.mrb[17].mxu1  ;;  %v832_v52 = vmul.f32 %v2141_v40, %v2141_v40 }
 0x27c   :  { %v2145_v42 = vpop.f32.mrb[18].mxu1  ;;  %v830_v48 = vmul.f32 %v2143_v41, %v2143_v41 }
 0x27d   :  { %v2147_v47 = vpop.f32.mrb[19].mxu1  ;;  %v833_v55 = vmul.f32 %v2145_v42, %v2145_v42 }
 0x27e   :  { %v792_v49 = vadd.f32 %v2147_v47, %v2143_v41  ;;  %v831_v51 = vmul.f32 %v2147_v47, %v2147_v47 }
 0x280   :  { %v793_v53 = vadd.f32 %v2141_v40, %v792_v49  ;;  %v862_v54 = vadd.f32 %v831_v51, %v830_v48 }
 0x282   :  { %v863_v57 = vadd.f32 %v862_v54, %v832_v52  ;;  %v2160_v61 = vpop.f32.mrb[20].mxu1  ;;  %v794_v62 = vadd.f32 %v2145_v42, %v793_v53 }
 0x283   :  { %v2163_v14 = vpop.f32.mrb[21].mxu1  ;;  %v836_v38 = vmul.f32 %v2160_v61, %v2160_v61 }
 0x284   :  { %v795_v1 = vadd.f32 %v794_v62, %v2163_v14  ;;  %v834_v5 = vmul.f32 %v2163_v14, %v2163_v14  ;;  %v864_v0 = vadd.f32 %v863_v57, %v833_v55  ;;  %v2168_v3 = vpop.f32.mrb[22].mxu1 }
 0x285   :  { %v2170_v18 = vpop.f32.mrb[23].mxu1  ;;  %v837_v36 = vmul.f32 %v2168_v3, %v2168_v3 }
 0x286   :  { %v865_v25 = vadd.f32 %v864_v0, %v834_v5  ;;  %v796_v16 = vadd.f32 %v795_v1, %v2170_v18  ;;  %v835_v23 = vmul.f32 %v2170_v18, %v2170_v18 }
 0x288   :  { %v797_v45 = vadd.f32 %v2160_v61, %v796_v16  ;;  %v866_v60 = vadd.f32 %v865_v25, %v835_v23 }
 0x28a   :  { %v867_v43 = vadd.f32 %v866_v60, %v836_v38  ;;  %v2180_v58 = vpop.f32.mrb[24].mxu1  ;;  %v798_v12 = vadd.f32 %v2168_v3, %v797_v45 }
 0x28b   :  { %v2183_v8 = vpop.f32.mrb[25].mxu1  ;;  %v840_v30 = vmul.f32 %v2180_v58, %v2180_v58 }
 0x28c   :  { %v799_v56 = vadd.f32 %v798_v12, %v2183_v8  ;;  %v838_v63 = vmul.f32 %v2183_v8, %v2183_v8  ;;  %v868_v4 = vadd.f32 %v867_v43, %v837_v36  ;;  %v2188_v10 = vpop.f32.mrb[26].mxu1 }
 0x28d   :  { %v2190_v2 = vpop.f32.mrb[27].mxu1  ;;  %v841_v17 = vmul.f32 %v2188_v10, %v2188_v10 }
 0x28e   :  { %v869_v6 = vadd.f32 %v868_v4, %v838_v63  ;;  %v800_v24 = vadd.f32 %v799_v56, %v2190_v2  ;;  %v839_v13 = vmul.f32 %v2190_v2, %v2190_v2 }
 0x290   :  { %v801_v15 = vadd.f32 %v2180_v58, %v800_v24  ;;  %v870_v19 = vadd.f32 %v869_v6, %v839_v13 }
 0x292   :  { %v871_v26 = vadd.f32 %v870_v19, %v840_v30  ;;  %v2200_v20 = vpop.f32.mrb[28].mxu1  ;;  %v802_v44 = vadd.f32 %v2188_v10, %v801_v15 }
 0x293   :  { %v2203_v21 = vpop.f32.mrb[29].mxu1  ;;  %v844_v11 = vmul.f32 %v2200_v20, %v2200_v20 }
 0x294   :  { %v803_v50 = vadd.f32 %v802_v44, %v2203_v21  ;;  %v842_v22 = vmul.f32 %v2203_v21, %v2203_v21  ;;  %v872_v39 = vadd.f32 %v871_v26, %v841_v17  ;;  %v2208_v27 = vpop.f32.mrb[30].mxu1 }
 0x295   :  { %v2210_v46 = vpop.f32.mrb[31].mxu1  ;;  %v845_v9 = vmul.f32 %v2208_v27, %v2208_v27 }
 0x296   :  { %v873_v28 = vadd.f32 %v872_v39, %v842_v22  ;;  %v804_v7 = vadd.f32 %v803_v50, %v2210_v46  ;;  %v843_v29 = vmul.f32 %v2210_v46, %v2210_v46 }
 0x298   :  { %v805_v59 = vadd.f32 %v2200_v20, %v804_v7  ;;  %v874_v31 = vadd.f32 %v873_v28, %v843_v29 }
 0x29a   :  { %v875_v32 = vadd.f32 %v874_v31, %v844_v11  ;;  %v2220_v33 = vpop.f32.mrb[32].mxu1  ;;  %v806_v34 = vadd.f32 %v2208_v27, %v805_v59 }
 0x29b   :  { %v2223_v37 = vpop.f32.mrb[33].mxu1  ;;  %v848_v62 = vmul.f32 %v2220_v33, %v2220_v33 }
 0x29c   :  { %v807_v48 = vadd.f32 %v806_v34, %v2223_v37  ;;  %v846_v49 = vmul.f32 %v2223_v37, %v2223_v37  ;;  %v876_v51 = vadd.f32 %v875_v32, %v845_v9  ;;  %v2228_v52 = vpop.f32.mrb[34].mxu1 }
 0x29d   :  { %v2230_v53 = vpop.f32.mrb[35].mxu1  ;;  %v849_v0 = vmul.f32 %v2228_v52, %v2228_v52 }
 0x29e   :  { %v877_v54 = vadd.f32 %v876_v51, %v846_v49  ;;  %v808_v55 = vadd.f32 %v807_v48, %v2230_v53  ;;  %v847_v57 = vmul.f32 %v2230_v53, %v2230_v53 }
 0x2a0   :  { %v809_v1 = vadd.f32 %v2220_v33, %v808_v55  ;;  %v878_v5 = vadd.f32 %v877_v54, %v847_v57 }
 0x2a2   :  { %v879_v25 = vadd.f32 %v878_v5, %v848_v62  ;;  %v2240_v16 = vpop.f32.mrb[36].mxu1  ;;  %v810_v23 = vadd.f32 %v2228_v52, %v809_v1 }
 0x2a3   :  { %v2243_v38 = vpop.f32.mrb[37].mxu1  ;;  %v852_v6 = vmul.f32 %v2240_v16, %v2240_v16 }
 0x2a4   :  { %v811_v45 = vadd.f32 %v810_v23, %v2243_v38  ;;  %v850_v60 = vmul.f32 %v2243_v38, %v2243_v38  ;;  %v880_v36 = vadd.f32 %v879_v25, %v849_v0  ;;  %v2248_v43 = vpop.f32.mrb[38].mxu1 }
 0x2a5   :  { %v2250_v12 = vpop.f32.mrb[39].mxu1  ;;  %v853_v30 = vmul.f32 %v2248_v43, %v2248_v43 }
 0x2a6   :  { %v881_v56 = vadd.f32 %v880_v36, %v850_v60  ;;  %v812_v63 = vadd.f32 %v811_v45, %v2250_v12  ;;  %v851_v4 = vmul.f32 %v2250_v12, %v2250_v12 }
 0x2a8   :  { %v813_v24 = vadd.f32 %v2240_v16, %v812_v63  ;;  %v882_v13 = vadd.f32 %v881_v56, %v851_v4 }
 0x2aa   :  { %v883_v15 = vadd.f32 %v882_v13, %v852_v6  ;;  %v2260_v19 = vpop.f32.mrb[40].mxu1  ;;  %v814_v17 = vadd.f32 %v2248_v43, %v813_v24 }
 0x2ab   :  { %v2263_v26 = vpop.f32.mrb[41].mxu1  ;;  %v856_v59 = vmul.f32 %v2260_v19, %v2260_v19 }
 0x2ac   :  { %v815_v44 = vadd.f32 %v814_v17, %v2263_v26  ;;  %v854_v50 = vmul.f32 %v2263_v26, %v2263_v26  ;;  %v884_v22 = vadd.f32 %v883_v15, %v853_v30  ;;  %v2268_v39 = vpop.f32.mrb[42].mxu1 }
 0x2ad   :  { %v2270_v28 = vpop.f32.mrb[43].mxu1  ;;  %v857_v32 = vmul.f32 %v2268_v39, %v2268_v39 }
 0x2ae   :  { %v885_v7 = vadd.f32 %v884_v22, %v854_v50  ;;  %v816_v29 = vadd.f32 %v815_v44, %v2270_v28  ;;  %v855_v11 = vmul.f32 %v2270_v28, %v2270_v28 }
 0x2b0   :  { %v817_v31 = vadd.f32 %v2260_v19, %v816_v29  ;;  %v886_v9 = vadd.f32 %v885_v7, %v855_v11 }
 0x2b2   :  { %v887_v34 = vadd.f32 %v886_v9, %v856_v59  ;;  %v2280_v48 = vpop.f32.mrb[44].mxu1  ;;  %v818_v49 = vadd.f32 %v2268_v39, %v817_v31 }
 0x2b3   :  { %v2283_v51 = vpop.f32.mrb[45].mxu1  ;;  %v860_v23 = vmul.f32 %v2280_v48, %v2280_v48 }
 0x2b4   :  { %v819_v54 = vadd.f32 %v818_v49, %v2283_v51  ;;  %v858_v55 = vmul.f32 %v2283_v51, %v2283_v51  ;;  %v888_v57 = vadd.f32 %v887_v34, %v857_v32  ;;  %v2288_v62 = vpop.f32.mrb[46].mxu1 }
 0x2b5   :  { %v780_v1 = vpop.f32.mrb[47].mxu1  ;;  %v861_v36 = vmul.f32 %v2288_v62, %v2288_v62 }
 0x2b6   :  { %v889_v5 = vadd.f32 %v888_v57, %v858_v55  ;;  %v820_v0 = vadd.f32 %v819_v54, %v780_v1  ;;  %v859_v25 = vmul.f32 %v780_v1, %v780_v1  ;;  %v903_v54 = vld [vmem:[#allocation6 + $0x2] sm:$0x1] }
 0x2b8   :  { %v821_v45 = vadd.f32 %v2280_v48, %v820_v0  ;;  %v890_v60 = vadd.f32 %v889_v5, %v859_v25  ;;  %v904_v5 = vld [vmem:[#allocation6 + $0x3] sm:$0x1] }
 0x2ba   :  { %v822_v56 = vadd.f32 %v2288_v62, %v821_v45  ;;  %v891_v63 = vadd.f32 %v890_v60, %v860_v23 }
 0x2bc   :  { %v823_v4 = vrot.slane %v822_v56, 4  ;;  %v892_v6 = vadd.f32 %v891_v63, %v861_v36 }
 0x2be   :  { %v824_v24 = vadd.f32 %v823_v4, %v822_v56  ;;  %v893_v13 = vrot.slane %v892_v6, 4 }
 0x2c0   :  { %v825_v30 = vrot.slane %v824_v24, 2  ;;  %v894_v15 = vadd.f32 %v893_v13, %v892_v6 }
 0x2c2   :  { %v826_v17 = vadd.f32 %v825_v30, %v824_v24  ;;  %v895_v44 = vrot.slane %v894_v15, 2 }
 0x2c4   :  { %v827_v50 = vrot.slane %v826_v17, 1  ;;  %v896_v22 = vadd.f32 %v895_v44, %v894_v15 }
 0x2c6   :  { %v828_v7 = vadd.f32 %v827_v50, %v826_v17  ;;  %v897_v29 = vrot.slane %v896_v22, 1 }
 0x2c8   :  { %v829_v11 = vmul.f32 0.00390625, %v828_v7  ;;  %v898_v59 = vadd.f32 %v897_v29, %v896_v22 }
 0x2ca   :  { %v899_v31 = vmul.f32 0.00390625, %v898_v59  ;;  %v900_v9 = vmul.f32 %v829_v11, %v829_v11 }
 0x2cc   :  { %v901_v32 = vsub.f32 %v899_v31, %v900_v9 }
 0x2ce   :  { %v902_v34 = vmax.f32 %v901_v32, 0.0 }
 0x2d0   :  { %v905_v49 = vadd.f32 1e-05, %v902_v34 }
 0x2d2   :  { %1805 = vrsqrt.f32 %v905_v49 }
 0x2dc   :  { %v1806_v55 = vpop.eup %1805 }
 0x2dd   :  { %v907_v57 = vmul.f32 %v1806_v55, %v903_v54 }
 0x2df   :  { %v908_v0 = vmul.f32 %v907_v57, %v829_v11  ;;  %v913_v25 = vrot.slane %v907_v57, %v2102_v35 }
 0x2e1   :  { %v909_v23 = vsub.f32 %v904_v5, %v908_v0  ;;  %v943_v45 = vmul.f32 %v913_v25, %v780_v1  ;;  %v914_v60 = vmul.f32 %v913_v25, %v2143_v41  ;;  %v915_v36 = vmul.f32 %v913_v25, %v2147_v47 }
 0x2e2   :  { %v916_v56 = vmul.f32 %v2141_v40, %v913_v25  ;;  %v917_v63 = vmul.f32 %v2145_v42, %v913_v25  ;;  %v918_v4 = vmul.f32 %v913_v25, %v2163_v14  ;;  %v919_v6 = vmul.f32 %v913_v25, %v2170_v18 }
 0x2e3   :  { %v949_v24 = vrot.slane %v909_v23, %v2102_v35  ;;  %v920_v13 = vmul.f32 %v2160_v61, %v913_v25  ;;  %v921_v30 = vmul.f32 %v2168_v3, %v913_v25  ;;  %v922_v1 = vmul.f32 %v913_v25, %v2183_v8 }
 0x2e4   :  { %v923_v41 = vmul.f32 %v913_v25, %v2190_v2  ;;  %v924_v47 = vmul.f32 %v2180_v58, %v913_v25  ;;  %v925_v40 = vmul.f32 %v2188_v10, %v913_v25  ;;  %v926_v42 = vmul.f32 %v913_v25, %v2203_v21 }
 0x2e5   :  { %v2311_v15 = vadd.f32 %v949_v24, %v943_v45  ;;  %v927_v14 = vmul.f32 %v913_v25, %v2210_v46  ;;  %v928_v18 = vmul.f32 %v2200_v20, %v913_v25  ;;  %v929_v61 = vmul.f32 %v2208_v27, %v913_v25 }
 0x2e6   :  { %v930_v3 = vmul.f32 %v913_v25, %v2223_v37  ;;  %v931_v8 = vmul.f32 %v913_v25, %v2230_v53  ;;  %v932_v2 = vmul.f32 %v2220_v33, %v913_v25  ;;  %v933_v58 = vmul.f32 %v2228_v52, %v913_v25 }
 0x2e7   :  { %v1011_v10 = vmax.f32 %v2311_v15, 0.0  ;;  %v934_v21 = vmul.f32 %v913_v25, %v2243_v38  ;;  %v935_v17 = vmul.f32 %v913_v25, %v2250_v12  ;;  %v936_v46 = vmul.f32 %v2240_v16, %v913_v25 }
 0x2e8   :  { %v937_v20 = vmul.f32 %v2248_v43, %v913_v25  ;;  %v938_v27 = vmul.f32 %v913_v25, %v2263_v26  ;;  %v939_v37 = vmul.f32 %v913_v25, %v2270_v28  ;;  %v940_v53 = vmul.f32 %v2260_v19, %v913_v25 }
 0x2e9   :  { %v941_v33 = vmul.f32 %v2268_v39, %v913_v25  ;;  %v942_v52 = vmul.f32 %v913_v25, %v2283_v51  ;;  %v944_v44 = vmul.f32 %v2280_v48, %v913_v25  ;;  %v945_v38 = vmul.f32 %v2288_v62, %v913_v25 }
 0x2ea   :  { %v950_v50 = vadd.f32 %v949_v24, %v914_v60  ;;  %v951_v12 = vadd.f32 %v949_v24, %v915_v36  ;;  %v952_v22 = vadd.f32 %v949_v24, %v916_v56  ;;  %v953_v16 = vadd.f32 %v949_v24, %v917_v63 }
 0x2eb   :  { %v954_v7 = vadd.f32 %v949_v24, %v918_v4  ;;  %v955_v43 = vadd.f32 %v949_v24, %v919_v6  ;;  %v956_v29 = vadd.f32 %v949_v24, %v920_v13  ;;  %v957_v26 = vadd.f32 %v949_v24, %v921_v30 }
 0x2ec   :  { %v958_v11 = vadd.f32 %v949_v24, %v922_v1  ;;  %v959_v28 = vadd.f32 %v949_v24, %v923_v41  ;;  %v960_v59 = vadd.f32 %v949_v24, %v924_v47  ;;  %v961_v19 = vadd.f32 %v949_v24, %v925_v40 }
 0x2ed   :  { %v962_v31 = vadd.f32 %v949_v24, %v926_v42  ;;  %v963_v39 = vadd.f32 %v949_v24, %v927_v14  ;;  %v964_v9 = vadd.f32 %v949_v24, %v928_v18  ;;  %v965_v51 = vadd.f32 %v949_v24, %v929_v61 }
 0x2ee   :  { %v966_v32 = vadd.f32 %v949_v24, %v930_v3  ;;  %v967_v48 = vadd.f32 %v949_v24, %v931_v8  ;;  %v968_v34 = vadd.f32 %v949_v24, %v932_v2  ;;  %v969_v62 = vadd.f32 %v949_v24, %v933_v58 }
 0x2ef   :  { %v970_v49 = vadd.f32 %v949_v24, %v934_v21  ;;  %v971_v54 = vadd.f32 %v949_v24, %v935_v17  ;;  %v972_v55 = vadd.f32 %v949_v24, %v936_v46  ;;  %v973_v57 = vadd.f32 %v949_v24, %v937_v20 }
 0x2f0   :  { %v974_v5 = vadd.f32 %v949_v24, %v938_v27  ;;  %v975_v0 = vadd.f32 %v949_v24, %v939_v37  ;;  %v976_v25 = vadd.f32 %v949_v24, %v940_v53  ;;  %v977_v23 = vadd.f32 %v949_v24, %v941_v33 }
 0x2f1   :  { %v978_v45 = vadd.f32 %v949_v24, %v942_v52  ;;  %v980_v60 = vadd.f32 %v949_v24, %v944_v44  ;;  %v981_v36 = vadd.f32 %v949_v24, %v945_v38  ;;  %v984_v56 = vmax.f32 %v952_v22, 0.0 }
 0x2f2   :  { %v985_v63 = vmax.f32 %v953_v16, 0.0  ;;  %v982_v4 = vmax.f32 %v950_v50, 0.0  ;;  %v983_v6 = vmax.f32 %v951_v12, 0.0  ;;  %v986_v13 = vmax.f32 %v954_v7, 0.0 }
 0x2f3   :  { %v987_v30 = vmax.f32 %v955_v43, 0.0  ;;  %v988_v1 = vmax.f32 %v956_v29, 0.0  ;;  %v989_v41 = vmax.f32 %v957_v26, 0.0  ;;  %v990_v47 = vmax.f32 %v958_v11, 0.0 }
 0x2f4   :  { %v1032_v40 = vpack.c.bf16 %v985_v63, %v984_v56  ;;  %v1031_v42 = vpack.c.bf16 %v983_v6, %v982_v4  ;;  %v991_v14 = vmax.f32 %v959_v28, 0.0  ;;  %v992_v18 = vmax.f32 %v960_v59, 0.0 }
 0x2f5   :  { %v1033_v61 = vpack.c.bf16 %v987_v30, %v986_v13  ;;  %v1034_v3 = vpack.c.bf16 %v989_v41, %v988_v1  ;;  %v993_v8 = vmax.f32 %v961_v19, 0.0  ;;  %v994_v2 = vmax.f32 %v962_v31, 0.0 }
 0x2f6   :  { %1724 = vmatprep.mubr.bf16.mxu0 %v1031_v42  ;;  %v1035_v58 = vpack.c.bf16 %v991_v14, %v990_v47  ;;  %v995_v24 = vmax.f32 %v963_v39, 0.0  ;;  %v996_v21 = vmax.f32 %v964_v9, 0.0  ;;  %v997_v17 = vmax.f32 %v965_v51, 0.0 }
 0x2f7   :  { %1725 = vmatmul.mubr.bf16.vlgmr.msra.gmra.mrb[16].mxu0 %v1032_v40  ;;  %v1036_v46 = vpack.c.bf16 %v993_v8, %v992_v18  ;;  %v998_v20 = vmax.f32 %v966_v32, 0.0  ;;  %v999_v27 = vmax.f32 %v967_v48, 0.0  ;;  %v1000_v37 = vmax.f32 %v968_v34, 0.0 }
 0x2f8   :  { %1728 = vmatprep.mubr.bf16.mxu0 %v1033_v61  ;;  %v1037_v53 = vpack.c.bf16 %v995_v24, %v994_v2  ;;  %v1038_v33 = vpack.c.bf16 %v997_v17, %v996_v21  ;;  %v1001_v52 = vmax.f32 %v969_v62, 0.0  ;;  %v1002_v44 = vmax.f32 %v970_v49, 0.0 }
 0x2f9   :  { %v1039_v38 = vpack.c.bf16 %v999_v27, %v998_v20  ;;  %v1003_v50 = vmax.f32 %v971_v54, 0.0  ;;  %v1004_v12 = vmax.f32 %v972_v55, 0.0  ;;  %v1005_v22 = vmax.f32 %v973_v57, 0.0 }
 0x2fa   :  { %v1040_v16 = vpack.c.bf16 %v1001_v52, %v1000_v37  ;;  %v1006_v7 = vmax.f32 %v974_v5, 0.0  ;;  %v1007_v43 = vmax.f32 %v975_v0, 0.0  ;;  %v1008_v29 = vmax.f32 %v976_v25, 0.0 }
 0x2fb   :  { %v1041_v26 = vpack.c.bf16 %v1003_v50, %v1002_v44  ;;  %v1042_v11 = vpack.c.bf16 %v1005_v22, %v1004_v12  ;;  %v1009_v28 = vmax.f32 %v977_v23, 0.0  ;;  %v1010_v59 = vmax.f32 %v978_v45, 0.0 }
 0x2fc   :  { %v1043_v19 = vpack.c.bf16 %v1007_v43, %v1006_v7  ;;  %v1012_v31 = vmax.f32 %v980_v60, 0.0  ;;  %v1013_v39 = vmax.f32 %v981_v36, 0.0 }
 0x2fd   :  { %v1044_v9 = vpack.c.bf16 %v1009_v28, %v1008_v29  ;;  %v1045_v51 = vpack.c.bf16 %v1011_v10, %v1010_v59 }
 0x2fe   :  { %v1046_v32 = vpack.c.bf16 %v1013_v39, %v1012_v31 }
 0x2ff   :  { %1729 = vmatmul.mubr.bf16.gmra.mrb[20].mxu0 %v1034_v3 }
 0x300   :  { %1732 = vmatprep.mubr.bf16.mxu0 %v1035_v58 }
 0x307   :  { %1733 = vmatmul.mubr.bf16.gmra.mrb[24].mxu0 %v1036_v46 }
 0x308   :  { %1736 = vmatprep.mubr.bf16.mxu0 %v1037_v53 }
 0x30f   :  { %1737 = vmatmul.mubr.bf16.gmra.mrb[28].mxu0 %v1038_v33 }
 0x310   :  { %1740 = vmatprep.mubr.bf16.mxu0 %v1039_v38 }
 0x317   :  { %1741 = vmatmul.mubr.bf16.gmra.mrb[32].mxu0 %v1040_v16 }
 0x318   :  { %1744 = vmatprep.mubr.bf16.mxu0 %v1041_v26 }
 0x31f   :  { %1745 = vmatmul.mubr.bf16.gmra.mrb[36].mxu0 %v1042_v11 }
 0x320   :  { %1748 = vmatprep.mubr.bf16.mxu0 %v1043_v19 }
 0x327   :  { %1749 = vmatmul.mubr.bf16.gmra.mrb[40].mxu0 %v1044_v9 }
 0x328   :  { %1752 = vmatprep.mubr.bf16.mxu0 %v1045_v51 }
 0x32f   :  { %1753 = vmatmul.mubr.bf16.gmra.mrb[44].mxu0 %v1046_v32 }
 0x3ca   :  { %v2334_v48 = vpop.f32.mrb[16].mxu0 }
 0x3cb   :  { %v2336_v34 = vpop.f32.mrb[17].mxu0  ;;  %v1296_v55 = vmul.f32 %v2334_v48, %v2334_v48 }
 0x3cc   :  { %v2338_v15 = vpop.f32.mrb[18].mxu0  ;;  %v1294_v62 = vmul.f32 %v2336_v34, %v2336_v34 }
 0x3cd   :  { %v2340_v10 = vpop.f32.mrb[19].mxu0  ;;  %v1297_v0 = vmul.f32 %v2338_v15, %v2338_v15 }
 0x3ce   :  { %v1256_v49 = vadd.f32 %v2340_v10, %v2336_v34  ;;  %v1295_v54 = vmul.f32 %v2340_v10, %v2340_v10 }
 0x3d0   :  { %v1257_v57 = vadd.f32 %v2334_v48, %v1256_v49  ;;  %v1326_v5 = vadd.f32 %v1295_v54, %v1294_v62 }
 0x3d2   :  { %v1327_v25 = vadd.f32 %v1326_v5, %v1296_v55  ;;  %v2353_v23 = vpop.f32.mrb[20].mxu0  ;;  %v1258_v45 = vadd.f32 %v2338_v15, %v1257_v57 }
 0x3d3   :  { %v2356_v60 = vpop.f32.mrb[21].mxu0  ;;  %v1300_v41 = vmul.f32 %v2353_v23, %v2353_v23 }
 0x3d4   :  { %v1259_v36 = vadd.f32 %v1258_v45, %v2356_v60  ;;  %v1298_v56 = vmul.f32 %v2356_v60, %v2356_v60  ;;  %v1328_v63 = vadd.f32 %v1327_v25, %v1297_v0  ;;  %v2361_v4 = vpop.f32.mrb[22].mxu0 }
 0x3d5   :  { %v2363_v6 = vpop.f32.mrb[23].mxu0  ;;  %v1301_v42 = vmul.f32 %v2361_v4, %v2361_v4 }
 0x3d6   :  { %v1329_v13 = vadd.f32 %v1328_v63, %v1298_v56  ;;  %v1260_v30 = vadd.f32 %v1259_v36, %v2363_v6  ;;  %v1299_v1 = vmul.f32 %v2363_v6, %v2363_v6 }
 0x3d8   :  { %v1261_v47 = vadd.f32 %v2353_v23, %v1260_v30  ;;  %v1330_v40 = vadd.f32 %v1329_v13, %v1299_v1 }
 0x3da   :  { %v1331_v14 = vadd.f32 %v1330_v40, %v1300_v41  ;;  %v2373_v18 = vpop.f32.mrb[24].mxu0  ;;  %v1262_v61 = vadd.f32 %v2361_v4, %v1261_v47 }
 0x3db   :  { %v2376_v3 = vpop.f32.mrb[25].mxu0  ;;  %v1304_v27 = vmul.f32 %v2373_v18, %v2373_v18 }
 0x3dc   :  { %v1263_v8 = vadd.f32 %v1262_v61, %v2376_v3  ;;  %v1302_v2 = vmul.f32 %v2376_v3, %v2376_v3  ;;  %v1332_v58 = vadd.f32 %v1331_v14, %v1301_v42  ;;  %v2381_v24 = vpop.f32.mrb[26].mxu0 }
 0x3dd   :  { %v2383_v21 = vpop.f32.mrb[27].mxu0  ;;  %v1305_v33 = vmul.f32 %v2381_v24, %v2381_v24 }
 0x3de   :  { %v1333_v17 = vadd.f32 %v1332_v58, %v1302_v2  ;;  %v1264_v46 = vadd.f32 %v1263_v8, %v2383_v21  ;;  %v1303_v20 = vmul.f32 %v2383_v21, %v2383_v21 }
 0x3e0   :  { %v1265_v37 = vadd.f32 %v2373_v18, %v1264_v46  ;;  %v1334_v53 = vadd.f32 %v1333_v17, %v1303_v20 }
 0x3e2   :  { %v1335_v52 = vadd.f32 %v1334_v53, %v1304_v27  ;;  %v2393_v44 = vpop.f32.mrb[28].mxu0  ;;  %v1266_v38 = vadd.f32 %v2381_v24, %v1265_v37 }
 0x3e3   :  { %v2396_v50 = vpop.f32.mrb[29].mxu0  ;;  %v1308_v28 = vmul.f32 %v2393_v44, %v2393_v44 }
 0x3e4   :  { %v1267_v12 = vadd.f32 %v1266_v38, %v2396_v50  ;;  %v1306_v22 = vmul.f32 %v2396_v50, %v2396_v50  ;;  %v1336_v16 = vadd.f32 %v1335_v52, %v1305_v33  ;;  %v2401_v7 = vpop.f32.mrb[30].mxu0 }
 0x3e5   :  { %v2403_v43 = vpop.f32.mrb[31].mxu0  ;;  %v1309_v31 = vmul.f32 %v2401_v7, %v2401_v7 }
 0x3e6   :  { %v1337_v29 = vadd.f32 %v1336_v16, %v1306_v22  ;;  %v1268_v26 = vadd.f32 %v1267_v12, %v2403_v43  ;;  %v1307_v11 = vmul.f32 %v2403_v43, %v2403_v43 }
 0x3e8   :  { %v1269_v59 = vadd.f32 %v2393_v44, %v1268_v26  ;;  %v1338_v19 = vadd.f32 %v1337_v29, %v1307_v11 }
 0x3ea   :  { %v1339_v39 = vadd.f32 %v1338_v19, %v1308_v28  ;;  %v2413_v9 = vpop.f32.mrb[32].mxu0  ;;  %v1270_v51 = vadd.f32 %v2401_v7, %v1269_v59 }
 0x3eb   :  { %v2416_v32 = vpop.f32.mrb[33].mxu0  ;;  %v1312_v45 = vmul.f32 %v2413_v9, %v2413_v9 }
 0x3ec   :  { %v1271_v62 = vadd.f32 %v1270_v51, %v2416_v32  ;;  %v1310_v49 = vmul.f32 %v2416_v32, %v2416_v32  ;;  %v1340_v54 = vadd.f32 %v1339_v39, %v1309_v31  ;;  %v2421_v55 = vpop.f32.mrb[34].mxu0 }
 0x3ed   :  { %v2423_v57 = vpop.f32.mrb[35].mxu0  ;;  %v1313_v63 = vmul.f32 %v2421_v55, %v2421_v55 }
 0x3ee   :  { %v1341_v5 = vadd.f32 %v1340_v54, %v1310_v49  ;;  %v1272_v0 = vadd.f32 %v1271_v62, %v2423_v57  ;;  %v1311_v25 = vmul.f32 %v2423_v57, %v2423_v57 }
 0x3f0   :  { %v1273_v36 = vadd.f32 %v2413_v9, %v1272_v0  ;;  %v1342_v56 = vadd.f32 %v1341_v5, %v1311_v25 }
 0x3f2   :  { %v1343_v13 = vadd.f32 %v1342_v56, %v1312_v45  ;;  %v2433_v30 = vpop.f32.mrb[36].mxu0  ;;  %v1274_v1 = vadd.f32 %v2421_v55, %v1273_v36 }
 0x3f3   :  { %v2436_v41 = vpop.f32.mrb[37].mxu0  ;;  %v1316_v17 = vmul.f32 %v2433_v30, %v2433_v30 }
 0x3f4   :  { %v1275_v47 = vadd.f32 %v1274_v1, %v2436_v41  ;;  %v1314_v40 = vmul.f32 %v2436_v41, %v2436_v41  ;;  %v1344_v42 = vadd.f32 %v1343_v13, %v1313_v63  ;;  %v2441_v14 = vpop.f32.mrb[38].mxu0 }
 0x3f5   :  { %v2443_v61 = vpop.f32.mrb[39].mxu0  ;;  %v1317_v27 = vmul.f32 %v2441_v14, %v2441_v14 }
 0x3f6   :  { %v1345_v8 = vadd.f32 %v1344_v42, %v1314_v40  ;;  %v1276_v2 = vadd.f32 %v1275_v47, %v2443_v61  ;;  %v1315_v58 = vmul.f32 %v2443_v61, %v2443_v61 }
 0x3f8   :  { %v1277_v46 = vadd.f32 %v2433_v30, %v1276_v2  ;;  %v1346_v20 = vadd.f32 %v1345_v8, %v1315_v58 }
 0x3fa   :  { %v1347_v37 = vadd.f32 %v1346_v20, %v1316_v17  ;;  %v2453_v53 = vpop.f32.mrb[40].mxu0  ;;  %v1278_v33 = vadd.f32 %v2441_v14, %v1277_v46 }
 0x3fb   :  { %v2456_v52 = vpop.f32.mrb[41].mxu0  ;;  %v1320_v59 = vmul.f32 %v2453_v53, %v2453_v53 }
 0x3fc   :  { %v1279_v38 = vadd.f32 %v1278_v33, %v2456_v52  ;;  %v1318_v12 = vmul.f32 %v2456_v52, %v2456_v52  ;;  %v1348_v22 = vadd.f32 %v1347_v37, %v1317_v27  ;;  %v2461_v16 = vpop.f32.mrb[42].mxu0 }
 0x3fd   :  { %v2463_v29 = vpop.f32.mrb[43].mxu0  ;;  %v1321_v39 = vmul.f32 %v2461_v16, %v2461_v16 }
 0x3fe   :  { %v1349_v26 = vadd.f32 %v1348_v22, %v1318_v12  ;;  %v1280_v11 = vadd.f32 %v1279_v38, %v2463_v29  ;;  %v1319_v28 = vmul.f32 %v2463_v29, %v2463_v29 }
 0x400   :  { %v1281_v19 = vadd.f32 %v2453_v53, %v1280_v11  ;;  %v1350_v31 = vadd.f32 %v1349_v26, %v1319_v28 }
 0x402   :  { %v1351_v51 = vadd.f32 %v1350_v31, %v1320_v59  ;;  %v2473_v62 = vpop.f32.mrb[44].mxu0  ;;  %v1282_v49 = vadd.f32 %v2461_v16, %v1281_v19 }
 0x403   :  { %v2476_v54 = vpop.f32.mrb[45].mxu0  ;;  %v1324_v1 = vmul.f32 %v2473_v62, %v2473_v62 }
 0x404   :  { %v1283_v5 = vadd.f32 %v1282_v49, %v2476_v54  ;;  %v1322_v0 = vmul.f32 %v2476_v54, %v2476_v54  ;;  %v1352_v25 = vadd.f32 %v1351_v51, %v1321_v39  ;;  %v2481_v45 = vpop.f32.mrb[46].mxu0 }
 0x405   :  { %v2483_v36 = vpop.f32.mrb[47].mxu0  ;;  %v1325_v42 = vmul.f32 %v2481_v45, %v2481_v45 }
 0x406   :  { %v1353_v56 = vadd.f32 %v1352_v25, %v1322_v0  ;;  %v1284_v63 = vadd.f32 %v1283_v5, %v2483_v36  ;;  %v1323_v13 = vmul.f32 %v2483_v36, %v2483_v36  ;;  %v1367_v5 = vld [vmem:[#allocation6 + $0x4] sm:$0x1] }
 0x408   :  { %v1285_v47 = vadd.f32 %v2473_v62, %v1284_v63  ;;  %v1354_v40 = vadd.f32 %v1353_v56, %v1323_v13  ;;  %v1368_v56 = vld [vmem:[#allocation6 + $0x5] sm:$0x1] }
 0x40a   :  { %v1286_v8 = vadd.f32 %v2481_v45, %v1285_v47  ;;  %v1355_v2 = vadd.f32 %v1354_v40, %v1324_v1 }
 0x40c   :  { %v1287_v58 = vrot.slane %v1286_v8, 4  ;;  %v1356_v17 = vadd.f32 %v1355_v2, %v1325_v42 }
 0x40e   :  { %v1288_v46 = vadd.f32 %v1287_v58, %v1286_v8  ;;  %v1357_v20 = vrot.slane %v1356_v17, 4 }
 0x410   :  { %v1289_v27 = vrot.slane %v1288_v46, 2  ;;  %v1358_v37 = vadd.f32 %v1357_v20, %v1356_v17 }
 0x412   :  { %v1290_v33 = vadd.f32 %v1289_v27, %v1288_v46  ;;  %v1359_v38 = vrot.slane %v1358_v37, 2 }
 0x414   :  { %v1291_v12 = vrot.slane %v1290_v33, 1  ;;  %v1360_v22 = vadd.f32 %v1359_v38, %v1358_v37 }
 0x416   :  { %v1292_v26 = vadd.f32 %v1291_v12, %v1290_v33  ;;  %v1361_v11 = vrot.slane %v1360_v22, 1 }
 0x418   :  { %v1293_v28 = vmul.f32 0.00390625, %v1292_v26  ;;  %v1362_v59 = vadd.f32 %v1361_v11, %v1360_v22 }
 0x41a   :  { %v1363_v19 = vmul.f32 0.00390625, %v1362_v59  ;;  %v1364_v31 = vmul.f32 %v1293_v28, %v1293_v28 }
 0x41c   :  { %v1365_v39 = vsub.f32 %v1363_v19, %v1364_v31 }
 0x41e   :  { %v1366_v51 = vmax.f32 %v1365_v39, 0.0 }
 0x420   :  { %v1369_v49 = vadd.f32 1e-05, %v1366_v51 }
 0x422   :  { %1807 = vrsqrt.f32 %v1369_v49 }
 0x42c   :  { %v1808_v0 = vpop.eup %1807 }
 0x42d   :  { %v1371_v25 = vmul.f32 %v1808_v0, %v1367_v5 }
 0x42f   :  { %v1372_v63 = vmul.f32 %v1371_v25, %v1293_v28  ;;  %v1377_v13 = vrot.slane %v1371_v25, %v2102_v35 }
 0x431   :  { %v1373_v1 = vsub.f32 %v1368_v56, %v1372_v63  ;;  %v1378_v47 = vmul.f32 %v1377_v13, %v2336_v34  ;;  %v1379_v40 = vmul.f32 %v1377_v13, %v2340_v10  ;;  %v1380_v42 = vmul.f32 %v2334_v48, %v1377_v13 }
 0x432   :  { %v1381_v8 = vmul.f32 %v2338_v15, %v1377_v13  ;;  %v1382_v2 = vmul.f32 %v1377_v13, %v2356_v60  ;;  %v1383_v58 = vmul.f32 %v1377_v13, %v2363_v6  ;;  %v1384_v17 = vmul.f32 %v2353_v23, %v1377_v13 }
 0x433   :  { %v1385_v46 = vmul.f32 %v2361_v4, %v1377_v13  ;;  %v1386_v20 = vmul.f32 %v1377_v13, %v2376_v3  ;;  %v1387_v27 = vmul.f32 %v1377_v13, %v2383_v21  ;;  %v1388_v34 = vmul.f32 %v2373_v18, %v1377_v13 }
 0x434   :  { %v1389_v10 = vmul.f32 %v2381_v24, %v1377_v13  ;;  %v1390_v48 = vmul.f32 %v1377_v13, %v2396_v50  ;;  %v1391_v15 = vmul.f32 %v1377_v13, %v2403_v43  ;;  %v1392_v60 = vmul.f32 %v2393_v44, %v1377_v13 }
 0x435   :  { %v1393_v6 = vmul.f32 %v2401_v7, %v1377_v13  ;;  %v1394_v23 = vmul.f32 %v1377_v13, %v2416_v32  ;;  %v1395_v4 = vmul.f32 %v1377_v13, %v2423_v57  ;;  %v1396_v3 = vmul.f32 %v2413_v9, %v1377_v13 }
 0x436   :  { %v1397_v21 = vmul.f32 %v2421_v55, %v1377_v13  ;;  %v1398_v18 = vmul.f32 %v1377_v13, %v2436_v41  ;;  %v1399_v24 = vmul.f32 %v1377_v13, %v2443_v61  ;;  %v1400_v50 = vmul.f32 %v2433_v30, %v1377_v13 }
 0x437   :  { %v1401_v43 = vmul.f32 %v2441_v14, %v1377_v13  ;;  %v1402_v44 = vmul.f32 %v1377_v13, %v2456_v52  ;;  %v1403_v7 = vmul.f32 %v1377_v13, %v2463_v29  ;;  %v1404_v32 = vmul.f32 %v2453_v53, %v1377_v13 }
 0x438   :  { %v1405_v57 = vmul.f32 %v2461_v16, %v1377_v13  ;;  %v1406_v9 = vmul.f32 %v1377_v13, %v2476_v54  ;;  %v1407_v55 = vmul.f32 %v1377_v13, %v2483_v36  ;;  %v1408_v41 = vmul.f32 %v2473_v62, %v1377_v13 }
 0x439   :  { %v1409_v61 = vmul.f32 %v2481_v45, %v1377_v13  ;;  %v1413_v30 = vrot.slane %v1373_v1, %v2102_v35 }
 0x43b   :  { %v1414_v37 = vadd.f32 %v1413_v30, %v1378_v47  ;;  %v1415_v14 = vadd.f32 %v1413_v30, %v1379_v40  ;;  %v1416_v33 = vadd.f32 %v1413_v30, %v1380_v42  ;;  %v1417_v52 = vadd.f32 %v1413_v30, %v1381_v8 }
 0x43c   :  { %v1418_v38 = vadd.f32 %v1413_v30, %v1382_v2  ;;  %v1419_v29 = vadd.f32 %v1413_v30, %v1383_v58  ;;  %v1420_v12 = vadd.f32 %v1413_v30, %v1384_v17  ;;  %v1421_v53 = vadd.f32 %v1413_v30, %v1385_v46 }
 0x43d   :  { %v1422_v22 = vadd.f32 %v1413_v30, %v1386_v20  ;;  %v1423_v16 = vadd.f32 %v1413_v30, %v1387_v27  ;;  %v1424_v26 = vadd.f32 %v1413_v30, %v1388_v34  ;;  %v1425_v54 = vadd.f32 %v1413_v30, %v1389_v10 }
 0x43e   :  { %v1426_v11 = vadd.f32 %v1413_v30, %v1390_v48  ;;  %v1427_v36 = vadd.f32 %v1413_v30, %v1391_v15  ;;  %v1428_v28 = vadd.f32 %v1413_v30, %v1392_v60  ;;  %v1429_v62 = vadd.f32 %v1413_v30, %v1393_v6 }
 0x43f   :  { %v1430_v59 = vadd.f32 %v1413_v30, %v1394_v23  ;;  %v1431_v45 = vadd.f32 %v1413_v30, %v1395_v4  ;;  %v1432_v19 = vadd.f32 %v1413_v30, %v1396_v3  ;;  %v1433_v35 = vadd.f32 %v1413_v30, %v1397_v21 }
 0x440   :  { %v2528_v31 = vadd.f32 %v1413_v30, %v1398_v18  ;;  %v2530_v39 = vadd.f32 %v1413_v30, %v1399_v24  ;;  %v2532_v51 = vadd.f32 %v1413_v30, %v1400_v50  ;;  %v2534_v49 = vadd.f32 %v1413_v30, %v1401_v43 }
 0x441   :  { %v2536_v5 = vadd.f32 %v1413_v30, %v1402_v44  ;;  %v2538_v0 = vadd.f32 %v1413_v30, %v1403_v7  ;;  %v2540_v25 = vadd.f32 %v1413_v30, %v1404_v32  ;;  %v2542_v56 = vadd.f32 %v1413_v30, %v1405_v57 }
 0x442   :  { %v2544_v63 = vadd.f32 %v1413_v30, %v1406_v9  ;;  %v2546_v13 = vadd.f32 %v1413_v30, %v1407_v55  ;;  %v2548_v1 = vadd.f32 %v1413_v30, %v1408_v41  ;;  %v2550_v47 = vadd.f32 %v1413_v30, %v1409_v61 }
 0x443   :  { %v1446_v40 = vmax.f32 %v1414_v37, 0.0  ;;  %v1447_v42 = vmax.f32 %v1415_v14, 0.0  ;;  %v1448_v8 = vmax.f32 %v1416_v33, 0.0  ;;  %v1449_v2 = vmax.f32 %v1417_v52, 0.0 }
 0x444   :  { %v1450_v58 = vmax.f32 %v1418_v38, 0.0  ;;  %v1451_v17 = vmax.f32 %v1419_v29, 0.0  ;;  %v1452_v46 = vmax.f32 %v1420_v12, 0.0  ;;  %v1453_v20 = vmax.f32 %v1421_v53, 0.0 }
 0x445   :  { %v1454_v27 = vmax.f32 %v1422_v22, 0.0  ;;  %v1455_v34 = vmax.f32 %v1423_v16, 0.0  ;;  %v1456_v10 = vmax.f32 %v1424_v26, 0.0  ;;  %v1457_v48 = vmax.f32 %v1425_v54, 0.0  ;;  %1478 = vst [vmem:[%s2663_s3] sm:$0xff] %v1446_v40  ;;  %1479 = vst [vmem:[%s2663_s3 + $0x8] sm:$0xff] %v1447_v42 }
 0x446   :  { %1480 = vst [vmem:[%s2663_s3 + $0x10] sm:$0xff] %v1448_v8  ;;  %1481 = vst [vmem:[%s2663_s3 + $0x18] sm:$0xff] %v1449_v2  ;;  %v1458_v15 = vmax.f32 %v1426_v11, 0.0  ;;  %v1459_v60 = vmax.f32 %v1427_v36, 0.0  ;;  %v1460_v6 = vmax.f32 %v1428_v28, 0.0  ;;  %v1461_v23 = vmax.f32 %v1429_v62, 0.0 }
 0x447   :  { %1482 = vst [vmem:[%s2663_s3 + $0x20] sm:$0xff] %v1450_v58  ;;  %1483 = vst [vmem:[%s2663_s3 + $0x28] sm:$0xff] %v1451_v17  ;;  %v1462_v4 = vmax.f32 %v1430_v59, 0.0  ;;  %v1463_v3 = vmax.f32 %v1431_v45, 0.0  ;;  %v1464_v21 = vmax.f32 %v1432_v19, 0.0  ;;  %v1465_v18 = vmax.f32 %v1433_v35, 0.0 }
 0x448   :  { %1484 = vst [vmem:[%s2663_s3 + $0x30] sm:$0xff] %v1452_v46  ;;  %1485 = vst [vmem:[%s2663_s3 + $0x38] sm:$0xff] %v1453_v20  ;;  %v1466_v24 = vmax.f32 %v2528_v31, 0.0  ;;  %v1467_v50 = vmax.f32 %v2530_v39, 0.0  ;;  %v1468_v43 = vmax.f32 %v2532_v51, 0.0  ;;  %v1469_v44 = vmax.f32 %v2534_v49, 0.0 }
 0x449   :  { %1486 = vst [vmem:[%s2663_s3 + $0x40] sm:$0xff] %v1454_v27  ;;  %1487 = vst [vmem:[%s2663_s3 + $0x48] sm:$0xff] %v1455_v34  ;;  %v1470_v7 = vmax.f32 %v2536_v5, 0.0  ;;  %v1471_v32 = vmax.f32 %v2538_v0, 0.0  ;;  %v1472_v57 = vmax.f32 %v2540_v25, 0.0  ;;  %v1473_v9 = vmax.f32 %v2542_v56, 0.0 }
 0x44a   :  { %1488 = vst [vmem:[%s2663_s3 + $0x50] sm:$0xff] %v1456_v10  ;;  %1489 = vst [vmem:[%s2663_s3 + $0x58] sm:$0xff] %v1457_v48  ;;  %v1474_v55 = vmax.f32 %v2544_v63, 0.0  ;;  %v1475_v41 = vmax.f32 %v2546_v13, 0.0  ;;  %v1476_v61 = vmax.f32 %v2548_v1, 0.0  ;;  %v1477_v30 = vmax.f32 %v2550_v47, 0.0 }
 0x44b   :  { %1490 = vst [vmem:[%s2663_s3 + $0x60] sm:$0xff] %v1458_v15  ;;  %1491 = vst [vmem:[%s2663_s3 + $0x68] sm:$0xff] %v1459_v60 }
 0x44c   :  { %1492 = vst [vmem:[%s2663_s3 + $0x70] sm:$0xff] %v1460_v6  ;;  %1493 = vst [vmem:[%s2663_s3 + $0x78] sm:$0xff] %v1461_v23 }
 0x44d   :  { %1494 = vst [vmem:[%s2663_s3 + $0x80] sm:$0xff] %v1462_v4  ;;  %1495 = vst [vmem:[%s2663_s3 + $0x88] sm:$0xff] %v1463_v3 }
 0x44e   :  { %1496 = vst [vmem:[%s2663_s3 + $0x90] sm:$0xff] %v1464_v21  ;;  %1497 = vst [vmem:[%s2663_s3 + $0x98] sm:$0xff] %v1465_v18 }
 0x44f   :  { %1498 = vst [vmem:[%s2663_s3 + $0xa0] sm:$0xff] %v1466_v24  ;;  %1499 = vst [vmem:[%s2663_s3 + $0xa8] sm:$0xff] %v1467_v50 }
 0x450   :  { %1500 = vst [vmem:[%s2663_s3 + $0xb0] sm:$0xff] %v1468_v43  ;;  %1501 = vst [vmem:[%s2663_s3 + $0xb8] sm:$0xff] %v1469_v44 }
 0x451   :  { %1502 = vst [vmem:[%s2663_s3 + $0xc0] sm:$0xff] %v1470_v7  ;;  %1503 = vst [vmem:[%s2663_s3 + $0xc8] sm:$0xff] %v1471_v32 }
 0x452   :  { %1504 = vst [vmem:[%s2663_s3 + $0xd0] sm:$0xff] %v1472_v57  ;;  %1505 = vst [vmem:[%s2663_s3 + $0xd8] sm:$0xff] %v1473_v9 }
 0x453   :  { %1506 = vst [vmem:[%s2663_s3 + $0xe0] sm:$0xff] %v1474_v55  ;;  %1507 = vst [vmem:[%s2663_s3 + $0xe8] sm:$0xff] %v1475_v41 }
 0x454   :  { %1508 = vst [vmem:[%s2663_s3 + $0xf0] sm:$0xff] %v1476_v61  ;;  %1509 = vst [vmem:[%s2663_s3 + $0xf8] sm:$0xff] %v1477_v30 }
 0x455   :  { %1514 = vsyncpa [#allocation3], 1 }
 0x456   :  { %1515 = vsyncpa [#allocation5], 1 }

</bundles_post_ra>
